<compile_context>
chip_gen: v7x
topology: tpu7x:2x2x1
jax: 0.10.0
libtpu: 0.0.40
codegen_flags: <defaults>
</compile_context>

<pallas_src>
import jax
import jax.numpy as jnp
from jax.experimental import pallas as pl
from jax.experimental.pallas import tpu as pltpu

INPUT_DIM = 16
HIDDEN = (512, 256, 128, 64)
LATENT = 5
LAT_PAD = 8            # latent padded to 8 lanes inside the kernel
N_DM = 4               # deep-matrix linears actually used: matrix[0..2] + final_layer
BATCH = 16
OUT_W = 128            # lane-dense output slab: [x_rec(16) | z_pad(8) | zeros]
BIAS_ROWS = 16
BIAS_W = 512
SMALL_ROWS = 104       # 64 (latent_map) + 4*8 (deep matrix) + 8 (decoder first layer)


def _ae_kernel(x_ref, bias_ref, small_ref, w512_ref, w256_ref, w128_ref, w64_ref,
               out_ref):
    def bdot(a, w_bf16):
        # bf16 MXU matmul with f32 accumulation (weights already stored bf16).
        return jnp.dot(a.astype(jnp.bfloat16), w_bf16,
                       preferred_element_type=jnp.float32)

    def fdot(a, w_f32):
        return jnp.dot(a, w_f32, preferred_element_type=jnp.float32)

    b = bias_ref

    # ---- encoder MLP: 16 -> 512 -> 256 -> 128 -> 64, ReLU after each --------
    h = x_ref[...]
    h = jnp.maximum(bdot(h, w512_ref[0:16, :]) + b[0:1, 0:512], 0.0)
    h = jnp.maximum(bdot(h, w256_ref[0:512, :]) + b[1:2, 0:256], 0.0)
    h = jnp.maximum(bdot(h, w128_ref[0:256, :]) + b[2:3, 0:128], 0.0)
    h = jnp.maximum(bdot(h, w64_ref[...]) + b[3:4, 0:64], 0.0)

    # ---- latent map 64 -> 5 (padded to 8 lanes), f32, no activation ---------
    z = fdot(h, small_ref[0:64, 0:LAT_PAD]) + b[4:5, 0:LAT_PAD]

    # ---- deep matrix: matrix[0..2] + final_layer, Linear(5,5), f32, no act --
    for r in range(N_DM):
        w = small_ref[64 + 8 * r:72 + 8 * r, 0:LAT_PAD]   # (8, 8) zero-padded
        z = fdot(z, w) + b[5 + r:6 + r, 0:LAT_PAD]
    # padding lanes 5..7 of z are exactly zero by construction.

    # ---- decoder MLP: 5 -> 64 -> 128 -> 256 -> 512, ReLU after each ---------
    d = jnp.maximum(fdot(z, small_ref[96:104, :]) + b[9:10, 0:64], 0.0)
    d = jnp.maximum(bdot(d, w128_ref[256:320, :]) + b[10:11, 0:128], 0.0)
    d = jnp.maximum(bdot(d, w256_ref[512:640, :]) + b[11:12, 0:256], 0.0)
    d = jnp.maximum(bdot(d, w512_ref[16:272, :]) + b[12:13, 0:512], 0.0)

    # ---- output map 512 -> 16, lane-dense transposed weight (16, 512) -------
    x_rec = jax.lax.dot_general(
        d.astype(jnp.bfloat16), w512_ref[272:288, :],
        dimension_numbers=(((1,), (1,)), ((), ())),
        preferred_element_type=jnp.float32) + b[13:14, 0:INPUT_DIM]

    # ---- single lane-dense output slab: [x_rec | z_pad | zeros] -------------
    pad = jnp.zeros((x_rec.shape[0], OUT_W - INPUT_DIM - LAT_PAD), jnp.float32)
    out_ref[...] = jnp.concatenate([x_rec, z, pad], axis=-1)


def pack_params(params):
    """Pack the 14 (W, b) pairs into 6 Pallas inputs (plus x at call time).

    - bias slab (16, 512) f32: rows = enc1..4, latent, dm0..2, dm_final, dec1..4, out.
    - small slab (104, 64) f32: latent_map (rows 0:64), deep-matrix 5x5 (rows 64+8r),
      decoder first weight (rows 96:101); unused entries are exactly zero.
    - four bf16 weight slabs grouped by lane width, row offsets multiples of 16:
        w512 (288, 512): we1[0:16]   | wd4[16:272] | wdo^T[272:288]
        w256 (640, 256): we2[0:512]  | wd3[512:640]
        w128 (320, 128): we3[0:256]  | wd2[256:320]
        w64  (128,  64): we4
    """
    (we1, be1), (we2, be2), (we3, be3), (we4, be4), (wlat, blat), \
        (wm0, bm0), (wm1, bm1), (wm2, bm2), (wmf, bmf), \
        (wd1, bd1), (wd2, bd2), (wd3, bd3), (wd4, bd4), (wdo, bdo) = params

    bias_pack = jnp.zeros((BIAS_ROWS, BIAS_W), jnp.float32)
    for i, bias in enumerate((be1, be2, be3, be4, blat, bm0, bm1, bm2, bmf,
                              bd1, bd2, bd3, bd4, bdo)):
        bias_pack = bias_pack.at[i, :bias.shape[0]].set(bias)

    small = jnp.zeros((SMALL_ROWS, 64), jnp.float32)
    small = small.at[:64, :LATENT].set(wlat)
    for r, w in enumerate((wm0, wm1, wm2, wmf)):
        small = small.at[64 + 8 * r:64 + 8 * r + LATENT, :LATENT].set(w)
    small = small.at[96:96 + LATENT, :].set(wd1)

    bf = lambda w: w.astype(jnp.bfloat16)
    w512 = jnp.concatenate([bf(we1), bf(wd4), bf(wdo).T], axis=0)   # (288, 512)
    w256 = jnp.concatenate([bf(we2), bf(wd3)], axis=0)              # (640, 256)
    w128 = jnp.concatenate([bf(we3), bf(wd2)], axis=0)              # (320, 128)
    w64 = bf(we4)                                                   # (128, 64)
    return bias_pack, small, w512, w256, w128, w64


@jax.jit
def mlp_ae_forward(x, packed):
    bias_pack, small_pack, w512, w256, w128, w64 = packed
    B = x.shape[0]
    vmem = pl.BlockSpec(memory_space=pltpu.MemorySpace.VMEM)  # whole array, no grid
    slab = pl.pallas_call(
        _ae_kernel,
        out_shape=jax.ShapeDtypeStruct((B, OUT_W), jnp.float32),
        in_specs=[vmem] * 7,
        out_specs=vmem,
    )(x, bias_pack, small_pack, w512, w256, w128, w64)
    x_rec = slab[:, :INPUT_DIM]
    z = slab[:, INPUT_DIM:INPUT_DIM + LATENT]
    return x_rec, z


def init_params(key):
    """PyTorch nn.Linear default init (uniform +-1/sqrt(fan_in)); weights stored
    transposed vs torch, i.e. (in_features, out_features), biases 1-D."""
    dims = (list(zip((INPUT_DIM,) + HIDDEN, HIDDEN + (LATENT,)))            # encoder + latent_map
            + [(LATENT, LATENT)] * N_DM                                     # deep matrix (used layers)
            + list(zip((LATENT,) + HIDDEN[::-1], HIDDEN[::-1] + (INPUT_DIM,))))  # decoder + output_map
    params = []
    for fan_in, fan_out in dims:
        key, kw, kb = jax.random.split(key, 3)
        bound = 1.0 / (fan_in ** 0.5)
        w = jax.random.uniform(kw, (fan_in, fan_out), jnp.float32, -bound, bound)
        b = jax.random.uniform(kb, (fan_out,), jnp.float32, -bound, bound)
        params.append((w, b))
    return params


def reference_forward(x, params):
    """Pure-JAX reference of MLPAutoEncoderWithDeepMatrix.forward mirroring the
    kernel's precision (bf16 weights / f32 accumulation on wide layers, pure f32
    on the narrow latent chain) so the comparison isolates kernel correctness."""
    def lin_bf16(h, w, bb):
        return jnp.dot(h.astype(jnp.bfloat16), w.astype(jnp.bfloat16),
                       preferred_element_type=jnp.float32) + bb

    def lin_f32(h, w, bb):
        return jnp.dot(h, w, preferred_element_type=jnp.float32) + bb

    enc, dm, dec = params[:5], params[5:5 + N_DM], params[5 + N_DM:]
    h = x
    for w, bb in enc[:-1]:
        h = jnp.maximum(lin_bf16(h, w, bb), 0.0)
    z = lin_f32(h, *enc[-1])             # latent map, no activation
    for w, bb in dm:                     # deep matrix, no activations
        z = lin_f32(z, w, bb)
    d = jnp.maximum(lin_f32(z, *dec[0]), 0.0)
    for w, bb in dec[1:-1]:
        d = jnp.maximum(lin_bf16(d, w, bb), 0.0)
    x_rec = lin_bf16(d, *dec[-1])        # output map, no activation
    return x_rec, z


def reference_forward_f32(x, params):
    """Pure-f32 reference (the true PyTorch-module precision) for a loose check."""
    def lin(h, w, bb):
        return jnp.dot(h, w, preferred_element_type=jnp.float32) + bb

    enc, dm, dec = params[:5], params[5:5 + N_DM], params[5 + N_DM:]
    h = x
    for w, bb in enc[:-1]:
        h = jnp.maximum(lin(h, w, bb), 0.0)
    z = lin(h, *enc[-1])
    for w, bb in dm:
        z = lin(z, w, bb)
    d = z
    for w, bb in dec[:-1]:
        d = jnp.maximum(lin(d, w, bb), 0.0)
    x_rec = lin(d, *dec[-1])
    return x_rec, z


if __name__ == "__main__":
    key = jax.random.PRNGKey(0)
    kx, kp = jax.random.split(key)
    x = jax.random.normal(kx, (BATCH, INPUT_DIM), jnp.float32)
    params = init_params(kp)
    packed = pack_params(params)

    # Packing invariant: latent lanes 5..7 must be zero in the small/bias slabs so
    # the padded latent lanes stay exactly zero through the whole deep-matrix chain.
    bias_pack, small_pack = packed[0], packed[1]
    assert float(jnp.abs(small_pack[:96, LATENT:]).max()) == 0.0
    assert float(jnp.abs(bias_pack[4:9, LATENT:]).max()) == 0.0

    x_rec, z = jax.block_until_ready(mlp_ae_forward(x, packed))
    assert x_rec.shape == (BATCH, INPUT_DIM) and z.shape == (BATCH, LATENT)

    # Tight check vs the precision-matched reference.
    x_ref, z_ref = reference_forward(x, params)
    for name, o, r in (("x_rec", x_rec, x_ref), ("z", z, z_ref)):
        diff = float(jnp.max(jnp.abs(o - r)))
        assert jnp.allclose(o, r, atol=1e-2, rtol=1e-2), (name, diff)

    # Loose sanity check vs the pure-f32 (true module precision) reference.
    x_f32, z_f32 = reference_forward_f32(x, params)
    for name, o, r in (("x_rec_f32", x_rec, x_f32), ("z_f32", z, z_f32)):
        diff = float(jnp.max(jnp.abs(o - r)))
        assert jnp.allclose(o, r, atol=1e-1, rtol=1e-1), (name, diff)

    print("KERNEL_OK")
</pallas_src>

<mosaic_0001>
module attributes {stable_mosaic.version = 11 : i64} {
  func.func @_ae_kernel(%arg0: memref<16x16xf32, #tpu.memory_space<vmem>>, %arg1: memref<16x512xf32, #tpu.memory_space<vmem>>, %arg2: memref<104x64xf32, #tpu.memory_space<vmem>>, %arg3: memref<288x512xbf16, #tpu.memory_space<vmem>>, %arg4: memref<640x256xbf16, #tpu.memory_space<vmem>>, %arg5: memref<320x128xbf16, #tpu.memory_space<vmem>>, %arg6: memref<128x64xbf16, #tpu.memory_space<vmem>>, %arg7: memref<16x128xf32, #tpu.memory_space<vmem>>) attributes {dimension_semantics = [], scalar_prefetch = 0 : i64, scratch_operands = 0 : i64, tpu.core_type = #tpu.core_type<tc>} {
    %c0 = arith.constant 0 : index
    %c0_0 = arith.constant 0 : index
    %0 = vector.load %arg0[%c0, %c0_0] : memref<16x16xf32, #tpu.memory_space<vmem>>, vector<16x16xf32>
    %c0_1 = arith.constant 0 : index
    %c0_2 = arith.constant 0 : index
    %1 = vector.load %arg3[%c0_1, %c0_2] : memref<288x512xbf16, #tpu.memory_space<vmem>>, vector<16x512xbf16>
    %2 = arith.truncf %0 : vector<16x16xf32> to vector<16x16xbf16>
    %cst = arith.constant dense<0.000000e+00> : vector<16x512xf32>
    %3 = tpu.matmul %2, %1, %cst {dimension_numbers = #tpu.dot_dimension_numbers<[1], [0], [0], [1], [0, 0, 1, 1], [], []>} : vector<16x16xbf16>, vector<16x512xbf16>, vector<16x512xf32> -> vector<16x512xf32>
    %c0_3 = arith.constant 0 : index
    %c0_4 = arith.constant 0 : index
    %4 = vector.load %arg1[%c0_3, %c0_4] : memref<16x512xf32, #tpu.memory_space<vmem>>, vector<1x512xf32>
    %5 = vector.broadcast %4 : vector<1x512xf32> to vector<16x512xf32>
    %6 = arith.addf %3, %5 : vector<16x512xf32>
    %cst_5 = arith.constant 0.000000e+00 : f32
    %7 = vector.broadcast %cst_5 : f32 to vector<16x512xf32>
    %8 = arith.maximumf %6, %7 : vector<16x512xf32>
    %c0_6 = arith.constant 0 : index
    %c0_7 = arith.constant 0 : index
    %9 = vector.load %arg4[%c0_6, %c0_7] : memref<640x256xbf16, #tpu.memory_space<vmem>>, vector<512x256xbf16>
    %10 = arith.truncf %8 : vector<16x512xf32> to vector<16x512xbf16>
    %cst_8 = arith.constant dense<0.000000e+00> : vector<16x256xf32>
    %11 = tpu.matmul %10, %9, %cst_8 {dimension_numbers = #tpu.dot_dimension_numbers<[1], [0], [0], [1], [0, 0, 1, 1], [], []>} : vector<16x512xbf16>, vector<512x256xbf16>, vector<16x256xf32> -> vector<16x256xf32>
    %c1 = arith.constant 1 : index
    %c0_9 = arith.constant 0 : index
    %12 = vector.load %arg1[%c1, %c0_9] : memref<16x512xf32, #tpu.memory_space<vmem>>, vector<1x256xf32>
    %13 = vector.broadcast %12 : vector<1x256xf32> to vector<16x256xf32>
    %14 = arith.addf %11, %13 : vector<16x256xf32>
    %cst_10 = arith.constant 0.000000e+00 : f32
    %15 = vector.broadcast %cst_10 : f32 to vector<16x256xf32>
    %16 = arith.maximumf %14, %15 : vector<16x256xf32>
    %c0_11 = arith.constant 0 : index
    %c0_12 = arith.constant 0 : index
    %17 = vector.load %arg5[%c0_11, %c0_12] : memref<320x128xbf16, #tpu.memory_space<vmem>>, vector<256x128xbf16>
    %18 = arith.truncf %16 : vector<16x256xf32> to vector<16x256xbf16>
    %cst_13 = arith.constant dense<0.000000e+00> : vector<16x128xf32>
    %19 = tpu.matmul %18, %17, %cst_13 {dimension_numbers = #tpu.dot_dimension_numbers<[1], [0], [0], [1], [0, 0, 1, 1], [], []>} : vector<16x256xbf16>, vector<256x128xbf16>, vector<16x128xf32> -> vector<16x128xf32>
    %c2 = arith.constant 2 : index
    %c0_14 = arith.constant 0 : index
    %20 = vector.load %arg1[%c2, %c0_14] : memref<16x512xf32, #tpu.memory_space<vmem>>, vector<1x128xf32>
    %21 = vector.broadcast %20 : vector<1x128xf32> to vector<16x128xf32>
    %22 = arith.addf %19, %21 : vector<16x128xf32>
    %cst_15 = arith.constant 0.000000e+00 : f32
    %23 = vector.broadcast %cst_15 : f32 to vector<16x128xf32>
    %24 = arith.maximumf %22, %23 : vector<16x128xf32>
    %c0_16 = arith.constant 0 : index
    %c0_17 = arith.constant 0 : index
    %25 = vector.load %arg6[%c0_16, %c0_17] : memref<128x64xbf16, #tpu.memory_space<vmem>>, vector<128x64xbf16>
    %26 = arith.truncf %24 : vector<16x128xf32> to vector<16x128xbf16>
    %cst_18 = arith.constant dense<0.000000e+00> : vector<16x64xf32>
    %27 = tpu.matmul %26, %25, %cst_18 {dimension_numbers = #tpu.dot_dimension_numbers<[1], [0], [0], [1], [0, 0, 1, 1], [], []>} : vector<16x128xbf16>, vector<128x64xbf16>, vector<16x64xf32> -> vector<16x64xf32>
    %c3 = arith.constant 3 : index
    %c0_19 = arith.constant 0 : index
    %28 = vector.load %arg1[%c3, %c0_19] : memref<16x512xf32, #tpu.memory_space<vmem>>, vector<1x64xf32>
    %29 = vector.broadcast %28 : vector<1x64xf32> to vector<16x64xf32>
    %30 = arith.addf %27, %29 : vector<16x64xf32>
    %cst_20 = arith.constant 0.000000e+00 : f32
    %31 = vector.broadcast %cst_20 : f32 to vector<16x64xf32>
    %32 = arith.maximumf %30, %31 : vector<16x64xf32>
    %c0_21 = arith.constant 0 : index
    %c0_22 = arith.constant 0 : index
    %33 = vector.load %arg2[%c0_21, %c0_22] : memref<104x64xf32, #tpu.memory_space<vmem>>, vector<64x8xf32>
    %cst_23 = arith.constant dense<0.000000e+00> : vector<16x8xf32>
    %34 = tpu.matmul %32, %33, %cst_23 {dimension_numbers = #tpu.dot_dimension_numbers<[1], [0], [0], [1], [0, 0, 1, 1], [], []>} : vector<16x64xf32>, vector<64x8xf32>, vector<16x8xf32> -> vector<16x8xf32>
    %c4 = arith.constant 4 : index
    %c0_24 = arith.constant 0 : index
    %35 = vector.load %arg1[%c4, %c0_24] : memref<16x512xf32, #tpu.memory_space<vmem>>, vector<1x8xf32>
    %36 = vector.broadcast %35 : vector<1x8xf32> to vector<16x8xf32>
    %37 = arith.addf %34, %36 : vector<16x8xf32>
    %c64 = arith.constant 64 : index
    %c0_25 = arith.constant 0 : index
    %38 = vector.load %arg2[%c64, %c0_25] : memref<104x64xf32, #tpu.memory_space<vmem>>, vector<8x8xf32>
    %cst_26 = arith.constant dense<0.000000e+00> : vector<16x8xf32>
    %39 = tpu.matmul %37, %38, %cst_26 {dimension_numbers = #tpu.dot_dimension_numbers<[1], [0], [0], [1], [0, 0, 1, 1], [], []>} : vector<16x8xf32>, vector<8x8xf32>, vector<16x8xf32> -> vector<16x8xf32>
    %c5 = arith.constant 5 : index
    %c0_27 = arith.constant 0 : index
    %40 = vector.load %arg1[%c5, %c0_27] : memref<16x512xf32, #tpu.memory_space<vmem>>, vector<1x8xf32>
    %41 = vector.broadcast %40 : vector<1x8xf32> to vector<16x8xf32>
    %42 = arith.addf %39, %41 : vector<16x8xf32>
    %c72 = arith.constant 72 : index
    %c0_28 = arith.constant 0 : index
    %43 = vector.load %arg2[%c72, %c0_28] : memref<104x64xf32, #tpu.memory_space<vmem>>, vector<8x8xf32>
    %cst_29 = arith.constant dense<0.000000e+00> : vector<16x8xf32>
    %44 = tpu.matmul %42, %43, %cst_29 {dimension_numbers = #tpu.dot_dimension_numbers<[1], [0], [0], [1], [0, 0, 1, 1], [], []>} : vector<16x8xf32>, vector<8x8xf32>, vector<16x8xf32> -> vector<16x8xf32>
    %c6 = arith.constant 6 : index
    %c0_30 = arith.constant 0 : index
    %45 = vector.load %arg1[%c6, %c0_30] : memref<16x512xf32, #tpu.memory_space<vmem>>, vector<1x8xf32>
    %46 = vector.broadcast %45 : vector<1x8xf32> to vector<16x8xf32>
    %47 = arith.addf %44, %46 : vector<16x8xf32>
    %c80 = arith.constant 80 : index
    %c0_31 = arith.constant 0 : index
    %48 = vector.load %arg2[%c80, %c0_31] : memref<104x64xf32, #tpu.memory_space<vmem>>, vector<8x8xf32>
    %cst_32 = arith.constant dense<0.000000e+00> : vector<16x8xf32>
    %49 = tpu.matmul %47, %48, %cst_32 {dimension_numbers = #tpu.dot_dimension_numbers<[1], [0], [0], [1], [0, 0, 1, 1], [], []>} : vector<16x8xf32>, vector<8x8xf32>, vector<16x8xf32> -> vector<16x8xf32>
    %c7 = arith.constant 7 : index
    %c0_33 = arith.constant 0 : index
    %50 = vector.load %arg1[%c7, %c0_33] : memref<16x512xf32, #tpu.memory_space<vmem>>, vector<1x8xf32>
    %51 = vector.broadcast %50 : vector<1x8xf32> to vector<16x8xf32>
    %52 = arith.addf %49, %51 : vector<16x8xf32>
    %c88 = arith.constant 88 : index
    %c0_34 = arith.constant 0 : index
    %53 = vector.load %arg2[%c88, %c0_34] : memref<104x64xf32, #tpu.memory_space<vmem>>, vector<8x8xf32>
    %cst_35 = arith.constant dense<0.000000e+00> : vector<16x8xf32>
    %54 = tpu.matmul %52, %53, %cst_35 {dimension_numbers = #tpu.dot_dimension_numbers<[1], [0], [0], [1], [0, 0, 1, 1], [], []>} : vector<16x8xf32>, vector<8x8xf32>, vector<16x8xf32> -> vector<16x8xf32>
    %c8 = arith.constant 8 : index
    %c0_36 = arith.constant 0 : index
    %55 = vector.load %arg1[%c8, %c0_36] : memref<16x512xf32, #tpu.memory_space<vmem>>, vector<1x8xf32>
    %56 = vector.broadcast %55 : vector<1x8xf32> to vector<16x8xf32>
    %57 = arith.addf %54, %56 : vector<16x8xf32>
    %c96 = arith.constant 96 : index
    %c0_37 = arith.constant 0 : index
    %58 = vector.load %arg2[%c96, %c0_37] : memref<104x64xf32, #tpu.memory_space<vmem>>, vector<8x64xf32>
    %cst_38 = arith.constant dense<0.000000e+00> : vector<16x64xf32>
    %59 = tpu.matmul %57, %58, %cst_38 {dimension_numbers = #tpu.dot_dimension_numbers<[1], [0], [0], [1], [0, 0, 1, 1], [], []>} : vector<16x8xf32>, vector<8x64xf32>, vector<16x64xf32> -> vector<16x64xf32>
    %c9 = arith.constant 9 : index
    %c0_39 = arith.constant 0 : index
    %60 = vector.load %arg1[%c9, %c0_39] : memref<16x512xf32, #tpu.memory_space<vmem>>, vector<1x64xf32>
    %61 = vector.broadcast %60 : vector<1x64xf32> to vector<16x64xf32>
    %62 = arith.addf %59, %61 : vector<16x64xf32>
    %cst_40 = arith.constant 0.000000e+00 : f32
    %63 = vector.broadcast %cst_40 : f32 to vector<16x64xf32>
    %64 = arith.maximumf %62, %63 : vector<16x64xf32>
    %c256 = arith.constant 256 : index
    %c0_41 = arith.constant 0 : index
    %65 = vector.load %arg5[%c256, %c0_41] : memref<320x128xbf16, #tpu.memory_space<vmem>>, vector<64x128xbf16>
    %66 = arith.truncf %64 : vector<16x64xf32> to vector<16x64xbf16>
    %cst_42 = arith.constant dense<0.000000e+00> : vector<16x128xf32>
    %67 = tpu.matmul %66, %65, %cst_42 {dimension_numbers = #tpu.dot_dimension_numbers<[1], [0], [0], [1], [0, 0, 1, 1], [], []>} : vector<16x64xbf16>, vector<64x128xbf16>, vector<16x128xf32> -> vector<16x128xf32>
    %c10 = arith.constant 10 : index
    %c0_43 = arith.constant 0 : index
    %68 = vector.load %arg1[%c10, %c0_43] : memref<16x512xf32, #tpu.memory_space<vmem>>, vector<1x128xf32>
    %69 = vector.broadcast %68 : vector<1x128xf32> to vector<16x128xf32>
    %70 = arith.addf %67, %69 : vector<16x128xf32>
    %cst_44 = arith.constant 0.000000e+00 : f32
    %71 = vector.broadcast %cst_44 : f32 to vector<16x128xf32>
    %72 = arith.maximumf %70, %71 : vector<16x128xf32>
    %c512 = arith.constant 512 : index
    %c0_45 = arith.constant 0 : index
    %73 = vector.load %arg4[%c512, %c0_45] : memref<640x256xbf16, #tpu.memory_space<vmem>>, vector<128x256xbf16>
    %74 = arith.truncf %72 : vector<16x128xf32> to vector<16x128xbf16>
    %cst_46 = arith.constant dense<0.000000e+00> : vector<16x256xf32>
    %75 = tpu.matmul %74, %73, %cst_46 {dimension_numbers = #tpu.dot_dimension_numbers<[1], [0], [0], [1], [0, 0, 1, 1], [], []>} : vector<16x128xbf16>, vector<128x256xbf16>, vector<16x256xf32> -> vector<16x256xf32>
    %c11 = arith.constant 11 : index
    %c0_47 = arith.constant 0 : index
    %76 = vector.load %arg1[%c11, %c0_47] : memref<16x512xf32, #tpu.memory_space<vmem>>, vector<1x256xf32>
    %77 = vector.broadcast %76 : vector<1x256xf32> to vector<16x256xf32>
    %78 = arith.addf %75, %77 : vector<16x256xf32>
    %cst_48 = arith.constant 0.000000e+00 : f32
    %79 = vector.broadcast %cst_48 : f32 to vector<16x256xf32>
    %80 = arith.maximumf %78, %79 : vector<16x256xf32>
    %c16 = arith.constant 16 : index
    %c0_49 = arith.constant 0 : index
    %81 = vector.load %arg3[%c16, %c0_49] : memref<288x512xbf16, #tpu.memory_space<vmem>>, vector<256x512xbf16>
    %82 = arith.truncf %80 : vector<16x256xf32> to vector<16x256xbf16>
    %cst_50 = arith.constant dense<0.000000e+00> : vector<16x512xf32>
    %83 = tpu.matmul %82, %81, %cst_50 {dimension_numbers = #tpu.dot_dimension_numbers<[1], [0], [0], [1], [0, 0, 1, 1], [], []>} : vector<16x256xbf16>, vector<256x512xbf16>, vector<16x512xf32> -> vector<16x512xf32>
    %c12 = arith.constant 12 : index
    %c0_51 = arith.constant 0 : index
    %84 = vector.load %arg1[%c12, %c0_51] : memref<16x512xf32, #tpu.memory_space<vmem>>, vector<1x512xf32>
    %85 = vector.broadcast %84 : vector<1x512xf32> to vector<16x512xf32>
    %86 = arith.addf %83, %85 : vector<16x512xf32>
    %cst_52 = arith.constant 0.000000e+00 : f32
    %87 = vector.broadcast %cst_52 : f32 to vector<16x512xf32>
    %88 = arith.maximumf %86, %87 : vector<16x512xf32>
    %89 = arith.truncf %88 : vector<16x512xf32> to vector<16x512xbf16>
    %c272 = arith.constant 272 : index
    %c0_53 = arith.constant 0 : index
    %90 = vector.load %arg3[%c272, %c0_53] : memref<288x512xbf16, #tpu.memory_space<vmem>>, vector<16x512xbf16>
    %cst_54 = arith.constant dense<0.000000e+00> : vector<16x16xf32>
    %91 = tpu.matmul %89, %90, %cst_54 {dimension_numbers = #tpu.dot_dimension_numbers<[1], [1], [0], [0], [0, 0, 1, 0], [], []>} : vector<16x512xbf16>, vector<16x512xbf16>, vector<16x16xf32> -> vector<16x16xf32>
    %c13 = arith.constant 13 : index
    %c0_55 = arith.constant 0 : index
    %92 = vector.load %arg1[%c13, %c0_55] : memref<16x512xf32, #tpu.memory_space<vmem>>, vector<1x16xf32>
    %93 = vector.broadcast %92 : vector<1x16xf32> to vector<16x16xf32>
    %94 = arith.addf %91, %93 : vector<16x16xf32>
    %cst_56 = arith.constant 0.000000e+00 : f32
    %95 = vector.broadcast %cst_56 : f32 to vector<16x104xf32>
    %96 = tpu.concatenate %94, %57, %95 in 1 : vector<16x16xf32>, vector<16x8xf32>, vector<16x104xf32> -> vector<16x128xf32>
    %c0_57 = arith.constant 0 : index
    %c0_58 = arith.constant 0 : index
    %97 = vector.load %arg7[%c0_57, %c0_58] : memref<16x128xf32, #tpu.memory_space<vmem>>, vector<16x128xf32>
    tpu.vector_store %arg7[%c0_57, %c0_58], %96 {strides = array<i32>} : memref<16x128xf32, #tpu.memory_space<vmem>>, vector<16x128xf32>,
    return
  }
}

</mosaic_0001>

<bundles_post_ra>
// kernel: mlp_ae_forward.1
= control target key start
LH: loop header
LB: loop body
LE: loop exit
PB: predicated region body
PF: predicated region fallthrough
CT: control target
= control target key end

     0   :  { %12 = vsyncpa [#allocation3], 0  ;;  %s3351_s0 = inlined_call_operand.vmem [shape: f32[16,16], index: 0, kind: input, shape index: {}]   ;;  %s3352_s1 = inlined_call_operand.vmem [shape: f32[16,512], index: 1, kind: input, shape index: {}]   ;;  %s3353_s2 = inlined_call_operand.vmem [shape: f32[104,64], index: 2, kind: input, shape index: {}]   ;;  %s3354_s3 = inlined_call_operand.hbm [shape: bf16[288,512], index: 3, kind: input, shape index: {}]   ;;  %s3355_s4 = inlined_call_operand.hbm [shape: bf16[640,256], index: 4, kind: input, shape index: {}]   ;;  %s3356_s5 = inlined_call_operand.vmem [shape: bf16[320,128], index: 5, kind: input, shape index: {}]   ;;  %s3357_s6 = inlined_call_operand.vmem [shape: bf16[128,64], index: 6, kind: input, shape index: {}]   ;;  %s3358_s7 = inlined_call_operand.vmem [shape: f32[16,128], index: 7, kind: output, shape index: {}]  }
   0x1   :  { %13 = vsyncpa [#allocation5], 0  ;;  %s3033_s24 = smov [#allocation2]   ;;  %s2985_s28 = scalar_lea.hbm %s3354_s3, 9216 }
   0x2   :  { %s25_s25 = sshll.u32 %s3033_s24, 4  ;;  %p2986_p0 = scmp.ne.s32.totalorder %s3354_s3, %s2985_s28  ;;  %s26_s25 = int_to_ptr.vmem [resolvable:$true] %s25_s25 }
   0x3   :  { %p2989_p1 = scmp.lt.u32.totalorder %s2985_s28, %s3354_s3 }
   0x5   :  { %p2991_p2 = pnand %p2989_p1, %p2986_p0 }
   0x7   :  { %2994 = shalt.err (!%p2991_p2)
}
   0x8   :  { %s2995_s10 = scalar_lea.vmem %s26_s25, 9216  ;;  %p3000_p4 = scmp.lt.s32.totalorder %s26_s25, %s26_s25 }
   0x9   :  { %p2996_p3 = scmp.ne.s32.totalorder %s26_s25, %s2995_s10  ;;  %p3001_p5 = scmp.lt.s32.totalorder %s2995_s10, %s2995_s10 }
   0xb   :  { %p3002_p6 = por %p3001_p5, %p3000_p4 }
   0xd   :  { %p3003_p7 = pnand %p3002_p6, %p2996_p3 }
   0xf   :  { %3006 = shalt.err (!%p3003_p7)
}
  0x10   :  { %s3034_s11 = smov 256   ;;  %s3035_s12 = smov 16  }
  0x11   :  { %31 = dma.hbm_to_vmem [thread:$0]  %s3354_s3, 9216, %s26_s25, [#allocation3], %s3034_s11, %s3034_s11, %s3035_s12  }
  0x12   :  { %s3036_s15 = smov [#allocation4]   ;;  %s3007_s19 = scalar_lea.hbm %s3355_s4, 10240 }
  0x13   :  { %s37_s16 = sshll.u32 %s3036_s15, 4  ;;  %p3008_p8 = scmp.ne.s32.totalorder %s3355_s4, %s3007_s19  ;;  %s38_s16 = int_to_ptr.vmem [resolvable:$true] %s37_s16 }
  0x14   :  { %p3011_p9 = scmp.lt.u32.totalorder %s3007_s19, %s3355_s4 }
  0x16   :  { %p3013_p10 = pnand %p3011_p9, %p3008_p8 }
  0x18   :  { %3016 = shalt.err (!%p3013_p10)
}
  0x19   :  { %s3017_s24 = scalar_lea.vmem %s38_s16, 10240  ;;  %p3022_p12 = scmp.lt.s32.totalorder %s38_s16, %s38_s16 }
  0x1a   :  { %p3018_p11 = scmp.ne.s32.totalorder %s38_s16, %s3017_s24  ;;  %p3023_p13 = scmp.lt.s32.totalorder %s3017_s24, %s3017_s24 }
  0x1c   :  { %p3024_p0 = por %p3023_p13, %p3022_p12 }
  0x1e   :  { %p3025_p1 = pnand %p3024_p0, %p3018_p11 }
  0x20   :  { %3028 = shalt.err (!%p3025_p1)
}
  0x21   :  { %s3037_s3 = smov 128   ;;  %s3038_s25 = smov 8  }
  0x22   :  { %43 = dma.hbm_to_vmem [thread:$0]  %s3355_s4, 10240, %s38_s16, [#allocation5], %s3037_s3, %s3037_s3, %s3038_s25  }
  0x23   :  { %3029 = dma.done.wait [#allocation3], 9216  }
  0x24   :  { %3030 = vsyncadd [#allocation3], 4294958080 }
  0x25   :  { %3031 = dma.done.wait [#allocation5], 10240  }
  0x26   :  { %3032 = vsyncadd [#allocation5], 4294957056  ;;  %v3039_v0 = vmov 0   ;;  %v2729_v1 = vld [vmem:[#allocation2 + $0x4] ss:$16 sps:$4 sm:$0xff]   ;;  %v56_v4 = vld [vmem:[%s3351_s0 + $0x8] sm:$0xff]  ;;  %v64_v52 = vlaneseq }
  0x27   :  { %140 = vmatprep.mubr.bf16.mxu0 %v3039_v0  ;;  %183 = vmatprep.mubr.bf16.mxu1 %v3039_v0  ;;  %v2731_v2 = vld [vmem:[#allocation2] ss:$16 sps:$4 sm:$0xff]   ;;  %v2732_v6 = vld [vmem:[#allocation2 + $0xc] ss:$16 sps:$4 sm:$0xff]   ;;  %vm104_vm0 = vcmask 130048   ;;  %vm3041_vm1 = vmmov 0  }
  0x28   :  { %v55_v3 = vld [vmem:[%s3351_s0] sm:$0xff]  ;;  %108 = vmatprep.subr.bf16.mxu0 %v2729_v1  ;;  %v2734_v7 = vld [vmem:[#allocation2 + $0x8] ss:$16 sps:$4 sm:$0xff]   ;;  %151 = vmatprep.subr.bf16.mxu1 %v2732_v6  ;;  %v2740_v10 = vld [vmem:[#allocation4 + $0x14] ss:$8 sps:$4 sm:$0xff]   ;;  %v3150_v53 = vshrl.u32 %v64_v52, 7 }
  0x29   :  { %v61_v5 = vpack.c.bf16 %v56_v4, %v55_v3  ;;  %109 = vmatpush1.bf16.msra.mxu0 %v2731_v2  ;;  %v2735_v8 = vld [vmem:[#allocation4] ss:$8 sps:$4 sm:$0xff]   ;;  %v2737_v9 = vld [vmem:[#allocation4 + $0x4] ss:$8 sps:$4 sm:$0xff]   ;;  %152 = vmatpush1.bf16.msra.mxu1 %v2734_v7  ;;  %v2738_v11 = vld [vmem:[#allocation4 + $0x10] ss:$8 sps:$4 sm:$0xff]  }
  0x2a   :  { %603 = vmatprep.subr.bf16.mxu0 %v2737_v9  ;;  %v2743_v12 = vld [vmem:[#allocation4 + $0x24] ss:$8 sps:$4 sm:$0xff]   ;;  %v2741_v13 = vld [vmem:[#allocation4 + $0x20] ss:$8 sps:$4 sm:$0xff]   ;;  %v2746_v14 = vld [vmem:[#allocation4 + $0x34] ss:$8 sps:$4 sm:$0xff]  }
  0x2b   :  { %v2744_v15 = vld [vmem:[#allocation4 + $0x30] ss:$8 sps:$4 sm:$0xff]   ;;  %v2749_v16 = vld [vmem:[#allocation4 + $0x44] ss:$8 sps:$4 sm:$0xff]   ;;  %v2747_v17 = vld [vmem:[#allocation4 + $0x40] ss:$8 sps:$4 sm:$0xff]  }
  0x2c   :  { %2359 = vmatmul.mubr.msk.bf16.vlgmr.msra.gmra.mrb[0].mxu0 %vm104_vm0, %v61_v5  ;;  %2360 = vmatmul.mubr.msk.bf16.vlgmr.msra.gmra.mrb[0].mxu1 %vm104_vm0, %v61_v5  ;;  %v2752_v18 = vld [vmem:[#allocation4 + $0x54] ss:$8 sps:$4 sm:$0xff]   ;;  %v2750_v19 = vld [vmem:[#allocation4 + $0x50] ss:$8 sps:$4 sm:$0xff]   ;;  %v2755_v20 = vld [vmem:[#allocation4 + $0x64] ss:$8 sps:$4 sm:$0xff]  }
  0x2d   :  { %604 = vmatpush1.bf16.msra.mxu0 %v2735_v8  ;;  %v2753_v21 = vld [vmem:[#allocation4 + $0x60] ss:$8 sps:$4 sm:$0xff]   ;;  %v2758_v22 = vld [vmem:[#allocation4 + $0x74] ss:$8 sps:$4 sm:$0xff]   ;;  %v2756_v23 = vld [vmem:[#allocation4 + $0x70] ss:$8 sps:$4 sm:$0xff]  }
  0x2e   :  { %605 = vmatprep.subr.bf16.mxu0 %v2740_v10  ;;  %v2761_v24 = vld [vmem:[#allocation4 + $0x84] ss:$8 sps:$4 sm:$0xff]   ;;  %v2759_v25 = vld [vmem:[#allocation4 + $0x80] ss:$8 sps:$4 sm:$0xff]   ;;  %v2764_v26 = vld [vmem:[#allocation4 + $0x94] ss:$8 sps:$4 sm:$0xff]  }
  0x2f   :  { %v2762_v27 = vld [vmem:[#allocation4 + $0x90] ss:$8 sps:$4 sm:$0xff]   ;;  %v2767_v28 = vld [vmem:[#allocation4 + $0xa4] ss:$8 sps:$4 sm:$0xff]   ;;  %v2765_v29 = vld [vmem:[#allocation4 + $0xa0] ss:$8 sps:$4 sm:$0xff]  }
  0x30   :  { %v2770_v30 = vld [vmem:[#allocation4 + $0xb4] ss:$8 sps:$4 sm:$0xff]   ;;  %v2768_v31 = vld [vmem:[#allocation4 + $0xb0] ss:$8 sps:$4 sm:$0xff]   ;;  %v2773_v32 = vld [vmem:[#allocation4 + $0xc4] ss:$8 sps:$4 sm:$0xff]  }
  0x31   :  { %606 = vmatpush1.bf16.msra.mxu0 %v2738_v11  ;;  %v2771_v33 = vld [vmem:[#allocation4 + $0xc0] ss:$8 sps:$4 sm:$0xff]   ;;  %v2776_v34 = vld [vmem:[#allocation4 + $0xd4] ss:$8 sps:$4 sm:$0xff]   ;;  %v2774_v35 = vld [vmem:[#allocation4 + $0xd0] ss:$8 sps:$4 sm:$0xff]  }
  0x32   :  { %607 = vmatprep.subr.bf16.mxu0 %v2743_v12  ;;  %v2779_v36 = vld [vmem:[#allocation4 + $0xe4] ss:$8 sps:$4 sm:$0xff]   ;;  %v2777_v37 = vld [vmem:[#allocation4 + $0xe0] ss:$8 sps:$4 sm:$0xff]   ;;  %v2782_v38 = vld [vmem:[#allocation4 + $0xf4] ss:$8 sps:$4 sm:$0xff]  }
  0x33   :  { %v2780_v39 = vld [vmem:[#allocation4 + $0xf0] ss:$8 sps:$4 sm:$0xff]   ;;  %v2785_v40 = vld [vmem:[#allocation4 + $0x104] ss:$8 sps:$4 sm:$0xff]   ;;  %v3153_v54 = vsub.s32 0, %v3150_v53  ;;  %v3159_v56 = vsub.s32 1, %v3150_v53 }
  0x34   :  { %v2831_v41 = vld [vmem:[%s3356_s5 + $0x40] sm:$0xff]   ;;  %v2833_v43 = vld [vmem:[%s3356_s5 + $0x48] sm:$0xff]   ;;  %v2835_v45 = vld [vmem:[%s3356_s5 + $0x50] sm:$0xff]   ;;  %v74_v57 = vsub.s32 2, %v3150_v53  ;;  %v78_v58 = vsub.s32 3, %v3150_v53  ;;  %vm985_vm2 = vcmask 523264  }
  0x35   :  { %608 = vmatpush1.bf16.msra.mxu0 %v2741_v13  ;;  %v2832_v42 = vld [vmem:[%s3356_s5] sm:$0xff]   ;;  %2553 = vmatprep.subr.bf16.mxu1 %v2831_v41  ;;  %v2834_v44 = vld [vmem:[%s3356_s5 + $0x8] sm:$0xff]   ;;  %v2836_v46 = vld [vmem:[%s3356_s5 + $0x10] sm:$0xff]   ;;  %vm1069_vm3 = vcmask 64512   ;;  %vm2344_vm4 = vcmask 195584  }
  0x36   :  { %609 = vmatprep.subr.bf16.mxu0 %v2746_v14  ;;  %2554 = vmatpush3.bf16.msra.mxu1 %v2832_v42  ;;  %v2837_v47 = vld [vmem:[%s3356_s5 + $0x58] sm:$0xff]   ;;  %v2839_v49 = vld [vmem:[%s3356_s5 + $0x60] sm:$0xff]   ;;  %v2841_v51 = vld [vmem:[%s3356_s5 + $0x68] sm:$0xff]  }
  0x37   :  { %2555 = vmatprep.subr.bf16.mxu1 %v2833_v43  ;;  %v2838_v48 = vld [vmem:[%s3356_s5 + $0x18] sm:$0xff]   ;;  %v2840_v50 = vld [vmem:[%s3356_s5 + $0x20] sm:$0xff]  }
  0x38   :  { %v62_v55 = vld [vmem:[%s3352_s1] ss:$8 sm:$0xf]  ;;  %v2806_v41 = vld [vmem:[#allocation4 + $0x174] ss:$8 sps:$4 sm:$0xff]  }
  0x39   :  { %610 = vmatpush1.bf16.msra.mxu0 %v2744_v15  ;;  %v67_v59 = vrot.slane %v62_v55, %v3153_v54  ;;  %v71_v60 = vrot.slane %v62_v55, %v3159_v56  ;;  %v75_v61 = vrot.slane %v62_v55, %v74_v57  ;;  %v79_v63 = vrot.slane %v62_v55, %v78_v58  ;;  %v2804_v42 = vld [vmem:[#allocation4 + $0x170] ss:$8 sps:$4 sm:$0xff]   ;;  %v2809_v43 = vld [vmem:[#allocation4 + $0x184] ss:$8 sps:$4 sm:$0xff]   ;;  %v2819_v52 = vld [vmem:[#allocation4 + $0x1c0] ss:$8 sps:$4 sm:$0xff]  }
  0x3a   :  { %611 = vmatprep.subr.bf16.mxu0 %v2749_v16  ;;  %2556 = vmatpush3.bf16.msra.mxu1 %v2834_v44  ;;  %v2807_v44 = vld [vmem:[#allocation4 + $0x180] ss:$8 sps:$4 sm:$0xff]   ;;  %v2824_v55 = vld [vmem:[#allocation4 + $0x1d4] ss:$8 sps:$4 sm:$0xff]  }
  0x3b   :  { %2557 = vmatprep.subr.bf16.mxu1 %v2835_v45  ;;  %v2812_v45 = vld [vmem:[#allocation4 + $0x194] ss:$8 sps:$4 sm:$0xff]  }
  0x3d   :  { %612 = vmatpush1.bf16.msra.mxu0 %v2747_v17 }
  0x3e   :  { %613 = vmatprep.subr.bf16.mxu0 %v2752_v18  ;;  %2558 = vmatpush3.bf16.msra.mxu1 %v2836_v46  ;;  %v2810_v46 = vld [vmem:[#allocation4 + $0x190] ss:$8 sps:$4 sm:$0xff]  }
  0x3f   :  { %2559 = vmatprep.subr.bf16.mxu1 %v2837_v47  ;;  %v2815_v47 = vld [vmem:[#allocation4 + $0x1a4] ss:$8 sps:$4 sm:$0xff]  }
  0x41   :  { %614 = vmatpush1.bf16.msra.mxu0 %v2750_v19 }
  0x42   :  { %615 = vmatprep.subr.bf16.mxu0 %v2755_v20  ;;  %2560 = vmatpush3.bf16.msra.mxu1 %v2838_v48  ;;  %v2813_v48 = vld [vmem:[#allocation4 + $0x1a0] ss:$8 sps:$4 sm:$0xff]  }
  0x43   :  { %2561 = vmatprep.subr.bf16.mxu1 %v2839_v49  ;;  %v2818_v49 = vld [vmem:[#allocation4 + $0x1b4] ss:$8 sps:$4 sm:$0xff]  }
  0x45   :  { %616 = vmatpush1.bf16.msra.mxu0 %v2753_v21 }
  0x46   :  { %617 = vmatprep.subr.bf16.mxu0 %v2758_v22  ;;  %2562 = vmatpush3.bf16.msra.mxu1 %v2840_v50  ;;  %v2816_v50 = vld [vmem:[#allocation4 + $0x1b0] ss:$8 sps:$4 sm:$0xff]  }
  0x47   :  { %2563 = vmatprep.subr.bf16.mxu1 %v2841_v51  ;;  %v2821_v51 = vld [vmem:[#allocation4 + $0x1c4] ss:$8 sps:$4 sm:$0xff]  }
  0x49   :  { %618 = vmatpush1.bf16.msra.mxu0 %v2756_v23 }
  0x4a   :  { %619 = vmatprep.subr.bf16.mxu0 %v2761_v24 }
  0x4d   :  { %620 = vmatpush1.bf16.msra.mxu0 %v2759_v25  ;;  %v2783_v25 = vld [vmem:[#allocation4 + $0x100] ss:$8 sps:$4 sm:$0xff]  }
  0x4e   :  { %621 = vmatprep.subr.bf16.mxu0 %v2764_v26 }
  0x51   :  { %622 = vmatpush1.bf16.msra.mxu0 %v2762_v27  ;;  %v2788_v27 = vld [vmem:[#allocation4 + $0x114] ss:$8 sps:$4 sm:$0xff]  }
  0x52   :  { %623 = vmatprep.subr.bf16.mxu0 %v2767_v28 }
  0x55   :  { %624 = vmatpush1.bf16.msra.mxu0 %v2765_v29 }
  0x56   :  { %625 = vmatprep.subr.bf16.mxu0 %v2770_v30  ;;  %v2786_v30 = vld [vmem:[#allocation4 + $0x110] ss:$8 sps:$4 sm:$0xff]  }
  0x59   :  { %626 = vmatpush1.bf16.msra.mxu0 %v2768_v31  ;;  %v2791_v31 = vld [vmem:[#allocation4 + $0x124] ss:$8 sps:$4 sm:$0xff]  }
  0x5a   :  { %627 = vmatprep.subr.bf16.mxu0 %v2773_v32  ;;  %v2789_v32 = vld [vmem:[#allocation4 + $0x120] ss:$8 sps:$4 sm:$0xff]  }
  0x5d   :  { %628 = vmatpush1.bf16.msra.mxu0 %v2771_v33  ;;  %v2794_v33 = vld [vmem:[#allocation4 + $0x134] ss:$8 sps:$4 sm:$0xff]  }
  0x5e   :  { %629 = vmatprep.subr.bf16.mxu0 %v2776_v34  ;;  %v2792_v34 = vld [vmem:[#allocation4 + $0x130] ss:$8 sps:$4 sm:$0xff]  }
  0x61   :  { %630 = vmatpush1.bf16.msra.mxu0 %v2774_v35  ;;  %v2797_v35 = vld [vmem:[#allocation4 + $0x144] ss:$8 sps:$4 sm:$0xff]  }
  0x62   :  { %631 = vmatprep.subr.bf16.mxu0 %v2779_v36  ;;  %v2795_v36 = vld [vmem:[#allocation4 + $0x140] ss:$8 sps:$4 sm:$0xff]  }
  0x65   :  { %632 = vmatpush1.bf16.msra.mxu0 %v2777_v37  ;;  %v2800_v37 = vld [vmem:[#allocation4 + $0x154] ss:$8 sps:$4 sm:$0xff]  }
  0x66   :  { %633 = vmatprep.subr.bf16.mxu0 %v2782_v38  ;;  %v2798_v38 = vld [vmem:[#allocation4 + $0x150] ss:$8 sps:$4 sm:$0xff]  }
  0x69   :  { %634 = vmatpush1.bf16.msra.mxu0 %v2780_v39  ;;  %v2803_v39 = vld [vmem:[#allocation4 + $0x164] ss:$8 sps:$4 sm:$0xff]  }
  0x6a   :  { %646 = vmatprep.subr.bf16.mxu0 %v2785_v40  ;;  %v2801_v40 = vld [vmem:[#allocation4 + $0x160] ss:$8 sps:$4 sm:$0xff]  }
  0xff   :  { %v142_v62 = vpop.f32.mrb[0].mxu0  ;;  %v185_v5 = vpop.f32.mrb[0].mxu1 }
 0x100   :  { %v143_v1 = vadd.f32 %v142_v62, %v67_v59  ;;  %v144_v2 = vpop.f32.mrb[1].mxu0  ;;  %v186_v8 = vadd.f32 %v185_v5, %v75_v61  ;;  %v187_v9 = vpop.f32.mrb[1].mxu1  ;;  %v2830_v62 = vld [vmem:[#allocation4 + $0x1f4] ss:$8 sps:$4 sm:$0xff]  }
 0x101   :  { %v145_v3 = vadd.f32 %v144_v2, %v71_v60  ;;  %v146_v4 = vpop.f32.mrb[2].mxu0  ;;  %v188_v11 = vadd.f32 %v187_v9, %v79_v63  ;;  %v189_v12 = vpop.f32.mrb[2].mxu1  ;;  %v2843_v2 = vld [vmem:[%s3356_s5 + $0x70] sm:$0xff]   ;;  %v2846_v5 = vld [vmem:[%s3356_s5 + $0x38] sm:$0xff]  }
 0x102   :  { %v147_v6 = vadd.f32 %v146_v4, %v67_v59  ;;  %v148_v7 = vpop.f32.mrb[3].mxu0  ;;  %v194_v13 = vmax.f32 %v143_v1, 0.0  ;;  %v196_v15 = vmax.f32 %v186_v8, 0.0  ;;  %v190_v16 = vadd.f32 %v189_v12, %v75_v61  ;;  %v191_v17 = vpop.f32.mrb[3].mxu1  ;;  %v2822_v59 = vld [vmem:[#allocation4 + $0x1d0] ss:$8 sps:$4 sm:$0xff]  }
 0x103   :  { %v149_v10 = vadd.f32 %v148_v7, %v71_v60  ;;  %v195_v18 = vmax.f32 %v145_v3, 0.0  ;;  %v197_v20 = vmax.f32 %v188_v11, 0.0  ;;  %v192_v21 = vadd.f32 %v191_v17, %v79_v63  ;;  %v2827_v60 = vld [vmem:[#allocation4 + $0x1e4] ss:$8 sps:$4 sm:$0xff]   ;;  %v2825_v61 = vld [vmem:[#allocation4 + $0x1e0] ss:$8 sps:$4 sm:$0xff]  }
 0x104   :  { %v198_v14 = vmax.f32 %v147_v6, 0.0  ;;  %v200_v23 = vmax.f32 %v190_v16, 0.0  ;;  %v2828_v63 = vld [vmem:[#allocation4 + $0x1f0] ss:$8 sps:$4 sm:$0xff]   ;;  %v2842_v1 = vld [vmem:[%s3356_s5 + $0x28] sm:$0xff]   ;;  %v3040_v6 = vmov 0.0  }
 0x105   :  { %v199_v19 = vmax.f32 %v149_v10, 0.0  ;;  %v201_v26 = vmax.f32 %v192_v21, 0.0  ;;  %2564 = vmatpush3.bf16.msra.mxu1 %v2842_v1  ;;  %v2844_v3 = vld [vmem:[%s3356_s5 + $0x30] sm:$0xff]   ;;  %v2845_v4 = vld [vmem:[%s3356_s5 + $0x78] sm:$0xff]  }
 0x106   :  { %v266_v22 = vpack.c.bf16 %v198_v14, %v194_v13  ;;  %v3169_v28 = vpack.c.bf16 %v200_v23, %v196_v15  ;;  %2565 = vmatprep.subr.bf16.mxu1 %v2843_v2  ;;  %v2361_v7 = vld [vmem:[%s3352_s1 + $0x1] ss:$8 sm:$0x3] }
 0x107   :  { %v267_v24 = vpack.c.bf16 %v199_v19, %v195_v18  ;;  %v269_v29 = vpack.c.bf16 %v201_v26, %v197_v20  ;;  %v276_v8 = vrot.slane %v2361_v7, %v3153_v54  ;;  %v280_v9 = vrot.slane %v2361_v7, %v3159_v56  ;;  %v2849_v26 = vld [vmem:[%s3357_s6 + $0x10] sm:$0xff]  }
 0x109   :  { %635 = vmatprep.mubr.bf16.mxu0 %v267_v24  ;;  %2566 = vmatpush3.bf16.msra.mxu1 %v2844_v3  ;;  %v2847_v24 = vld [vmem:[%s3357_s6] sm:$0xff]  }
 0x10a   :  { %636 = vmatmul.mubr.bf16.vlgmr.msra.gmra.mrb[4].mxu0 %v266_v22  ;;  %2567 = vmatprep.subr.bf16.mxu1 %v2845_v4 }
 0x10b   :  { %647 = vmatpush1.bf16.msra.mxu0 %v2783_v25  ;;  %678 = vmatprep.mubr.bf16.mxu0 %v269_v29  ;;  %v2848_v25 = vld [vmem:[%s3357_s6 + $0x8] sm:$0xff]  }
 0x10c   :  { %648 = vmatprep.subr.bf16.mxu0 %v2788_v27  ;;  %v2850_v27 = vld [vmem:[%s3357_s6 + $0x18] sm:$0xff]   ;;  %v2852_v29 = vld [vmem:[%s3357_s6 + $0x28] sm:$0xff]  }
 0x10d   :  { %2568 = vmatpush3.bf16.msra.mxu1 %v2846_v5 }
 0x10e   :  { %2614 = vmatprep.subr.bf16.mxu1 %v3040_v6 }
 0x10f   :  { %649 = vmatpush1.bf16.msra.mxu0 %v2786_v30  ;;  %v2853_v30 = vld [vmem:[%s3357_s6 + $0x30] sm:$0xff]  }
 0x110   :  { %650 = vmatprep.subr.bf16.mxu0 %v2791_v31  ;;  %v2854_v31 = vld [vmem:[%s3357_s6 + $0x38] sm:$0xff]  }
 0x113   :  { %651 = vmatpush1.bf16.msra.mxu0 %v2789_v32  ;;  %v976_v32 = vld [vmem:[%s3353_s2] sm:$0xff] }
 0x114   :  { %652 = vmatprep.subr.bf16.mxu0 %v2794_v33  ;;  %v977_v33 = vld [vmem:[%s3353_s2 + $0x8] sm:$0xff] }
 0x117   :  { %653 = vmatpush1.bf16.msra.mxu0 %v2792_v34  ;;  %v2690_v34 = vpack.c.bf16 %v977_v33, %v976_v32  ;;  %v1400_v32 = vld [vmem:[%s3353_s2 + $0x60] sm:$0xff] }
 0x118   :  { %654 = vmatprep.subr.bf16.mxu0 %v2797_v35  ;;  %v1318_v33 = vld [vmem:[%s3352_s1 + $0x20] ss:$0 sm:$0xff] }
 0x11b   :  { %655 = vmatpush1.bf16.msra.mxu0 %v2795_v36  ;;  %v727_v36 = vld [vmem:[%s3352_s1 + $0x2] ss:$0 sm:$0xff] }
 0x11c   :  { %656 = vmatprep.subr.bf16.mxu0 %v2800_v37 }
 0x11f   :  { %657 = vmatpush1.bf16.msra.mxu0 %v2798_v38 }
 0x120   :  { %658 = vmatprep.subr.bf16.mxu0 %v2803_v39 }
 0x123   :  { %659 = vmatpush1.bf16.msra.mxu0 %v2801_v40 }
 0x124   :  { %660 = vmatprep.subr.bf16.mxu0 %v2806_v41 }
 0x127   :  { %661 = vmatpush1.bf16.msra.mxu0 %v2804_v42 }
 0x128   :  { %662 = vmatprep.subr.bf16.mxu0 %v2809_v43 }
 0x12b   :  { %663 = vmatpush1.bf16.msra.mxu0 %v2807_v44  ;;  %v978_v44 = vld [vmem:[%s3353_s2 + $0x10] sm:$0xff] }
 0x12c   :  { %664 = vmatprep.subr.bf16.mxu0 %v2812_v45  ;;  %v979_v45 = vld [vmem:[%s3353_s2 + $0x18] sm:$0xff] }
 0x12f   :  { %665 = vmatpush1.bf16.msra.mxu0 %v2810_v46 }
 0x130   :  { %666 = vmatprep.subr.bf16.mxu0 %v2815_v47 }
 0x133   :  { %667 = vmatpush1.bf16.msra.mxu0 %v2813_v48 }
 0x134   :  { %668 = vmatprep.subr.bf16.mxu0 %v2818_v49  ;;  %v2694_v49 = vpack.c.bf16 %v979_v45, %v978_v44 }
 0x137   :  { %669 = vmatpush1.bf16.msra.mxu0 %v2816_v50  ;;  %v980_v50 = vld [vmem:[%s3353_s2 + $0x20] sm:$0xff] }
 0x138   :  { %670 = vmatprep.subr.bf16.mxu0 %v2821_v51  ;;  %v981_v51 = vld [vmem:[%s3353_s2 + $0x28] sm:$0xff] }
 0x13b   :  { %671 = vmatpush1.bf16.msra.mxu0 %v2819_v52  ;;  %v2698_v52 = vpack.c.bf16 %v981_v51, %v980_v50  ;;  %v2859_v50 = vld [vmem:[#allocation4 + $0x200] ss:$8 sps:$4 sm:$0xff]  }
 0x13c   :  { %672 = vmatprep.subr.bf16.mxu0 %v2824_v55  ;;  %v982_v55 = vld [vmem:[%s3353_s2 + $0x30] sm:$0xff] }
 0x13f   :  { %673 = vmatpush1.bf16.msra.mxu0 %v2822_v59  ;;  %v983_v59 = vld [vmem:[%s3353_s2 + $0x38] sm:$0xff] }
 0x140   :  { %674 = vmatprep.subr.bf16.mxu0 %v2827_v60  ;;  %v2702_v60 = vpack.c.bf16 %v983_v59, %v982_v55  ;;  %v2867_v55 = vld [vmem:[#allocation4 + $0x224] ss:$8 sps:$4 sm:$0xff]   ;;  %v2865_v59 = vld [vmem:[#allocation4 + $0x220] ss:$8 sps:$4 sm:$0xff]  }
 0x143   :  { %675 = vmatpush1.bf16.msra.mxu0 %v2825_v61  ;;  %v884_v61 = vld [vmem:[%s3352_s1 + $0x3] ss:$0 sm:$0xff] }
 0x144   :  { %676 = vmatprep.subr.bf16.mxu0 %v2830_v62 }
 0x147   :  { %677 = vmatpush1.bf16.msra.mxu0 %v2828_v63 }
 0x14a   :  { %679 = vmatmul.mubr.bf16.vlgmr.msra.gmra.mrb[4].mxu0 %v3169_v28  ;;  %v2851_v28 = vld [vmem:[%s3357_s6 + $0x20] sm:$0xff]  }
 0x21d   :  { %v680_v10 = vpop.f32.mrb[4].mxu0 }
 0x21e   :  { %v2706_v11 = vadd.f32 %v680_v10, %v276_v8  ;;  %v682_v12 = vpop.f32.mrb[5].mxu0 }
 0x21f   :  { %v2707_v13 = vadd.f32 %v682_v12, %v280_v9  ;;  %v684_v14 = vpop.f32.mrb[6].mxu0 }
 0x220   :  { %v2708_v15 = vadd.f32 %v684_v14, %v276_v8  ;;  %v686_v16 = vpop.f32.mrb[7].mxu0  ;;  %v689_v18 = vmax.f32 %v2706_v11, 0.0  ;;  %v1067_v8 = vld [vmem:[%s3353_s2 + $0x40] sm:$0xff]  ;;  %v1151_v14 = vld [vmem:[%s3353_s2 + $0x48] sm:$0xff] }
 0x221   :  { %v2709_v17 = vadd.f32 %v686_v16, %v280_v9  ;;  %v690_v20 = vmax.f32 %v2707_v13, 0.0  ;;  %v984_v9 = vld [vmem:[%s3352_s1 + $0x4] ss:$0 sm:$0xff] }
 0x222   :  { %v691_v19 = vmax.f32 %v2708_v15, 0.0  ;;  %v1068_v15 = vld [vmem:[%s3352_s1 + $0x5] ss:$0 sm:$0xff] }
 0x223   :  { %v692_v21 = vmax.f32 %v2709_v17, 0.0 }
 0x224   :  { %v725_v22 = vpack.c.bf16 %v691_v19, %v689_v18 }
 0x225   :  { %v726_v23 = vpack.c.bf16 %v692_v21, %v690_v20  ;;  %v1234_v20 = vld [vmem:[%s3353_s2 + $0x50] sm:$0xff]  ;;  %v1152_v21 = vld [vmem:[%s3352_s1 + $0x6] ss:$0 sm:$0xff] }
 0x227   :  { %856 = vmatprep.mubr.bf16.mxu1 %v726_v23 }
 0x228   :  { %857 = vmatmul.mubr.bf16.vlgmr.msra.gmra.mrb[4].mxu1 %v725_v22 }
 0x229   :  { %2615 = vmatpush3.bf16.msra.mxu1 %v2847_v24  ;;  %2630 = vmatprep.mubr.msk.bf16.mxu1 %vm3041_vm1, %v3040_v6 }
 0x22a   :  { %2616 = vmatprep.subr.bf16.mxu1 %v3040_v6 }
 0x22d   :  { %2617 = vmatpush3.bf16.msra.mxu1 %v2848_v25 }
 0x22e   :  { %2618 = vmatprep.subr.bf16.mxu1 %v3040_v6 }
 0x231   :  { %2619 = vmatpush3.bf16.msra.mxu1 %v2849_v26  ;;  %v1317_v26 = vld [vmem:[%s3353_s2 + $0x58] sm:$0xff] }
 0x232   :  { %2620 = vmatprep.subr.bf16.mxu1 %v3040_v6 }
 0x235   :  { %2621 = vmatpush3.bf16.msra.mxu1 %v2850_v27  ;;  %v1235_v27 = vld [vmem:[%s3352_s1 + $0x7] ss:$0 sm:$0xff] }
 0x236   :  { %2622 = vmatprep.subr.bf16.mxu1 %v3040_v6 }
 0x239   :  { %2623 = vmatpush3.bf16.msra.mxu1 %v2851_v28 }
 0x23a   :  { %2624 = vmatprep.subr.bf16.mxu1 %v3040_v6 }
 0x23d   :  { %2625 = vmatpush3.bf16.msra.mxu1 %v2852_v29 }
 0x23e   :  { %2626 = vmatprep.subr.bf16.mxu1 %v3040_v6 }
 0x241   :  { %2627 = vmatpush3.bf16.msra.mxu1 %v2853_v30 }
 0x242   :  { %2628 = vmatprep.subr.bf16.mxu1 %v3040_v6 }
 0x245   :  { %2629 = vmatpush3.bf16.msra.mxu1 %v2854_v31 }
 0x246   :  { %2691 = vmatprep.subr.bf16.mxu1 %v2690_v34 }
 0x2fb   :  { %v2569_v35 = vpop.f32.mrb[4].mxu1 }
 0x2fc   :  { %v2570_v37 = vpop.f32.mrb[5].mxu1 }
 0x2fd   :  { %v2571_v38 = vadd.f32 %v2570_v37, %v2569_v35  ;;  %v2572_v39 = vpop.f32.mrb[6].mxu1  ;;  %v2855_v37 = vld [vmem:[%s3356_s5 + $0x80] sm:$0xff]  }
 0x2fe   :  { %v2573_v40 = vpop.f32.mrb[7].mxu1 }
 0x2ff   :  { %v859_v41 = vadd.f32 %v2571_v38, %v727_v36  ;;  %v2574_v42 = vadd.f32 %v2573_v40, %v2572_v39  ;;  %v2856_v39 = vld [vmem:[%s3356_s5 + $0x88] sm:$0xff]   ;;  %v2857_v40 = vld [vmem:[%s3356_s5 + $0x90] sm:$0xff]  }
 0x301   :  { %v862_v43 = vadd.f32 %v2574_v42, %v727_v36  ;;  %v865_v46 = vmax.f32 %v859_v41, 0.0  ;;  %v2858_v41 = vld [vmem:[%s3356_s5 + $0x98] sm:$0xff]   ;;  %v2861_v42 = vld [vmem:[#allocation4 + $0x204] ss:$8 sps:$4 sm:$0xff]  }
 0x303   :  { %v866_v47 = vmax.f32 %v862_v43, 0.0  ;;  %v1401_v43 = vld [vmem:[%s3352_s1 + $0x21] ss:$0 sm:$0xff] }
 0x305   :  { %v883_v48 = vpack.c.bf16 %v866_v47, %v865_v46 }
 0x307   :  { %2631 = vmatmul.mubr.bf16.vlgmr.msra.gmra.mrb[8].mxu1 %v883_v48 }
 0x308   :  { %2693 = vmatpush3.bf16.msra.mxu1 %v2690_v34 }
 0x309   :  { %2695 = vmatprep.subr.bf16.mxu1 %v2694_v49 }
 0x30c   :  { %2697 = vmatpush3.bf16.msra.mxu1 %v2694_v49 }
 0x30d   :  { %2699 = vmatprep.subr.bf16.mxu1 %v2698_v52 }
 0x310   :  { %2701 = vmatpush3.bf16.msra.mxu1 %v2698_v52  ;;  %v2862_v52 = vld [vmem:[#allocation4 + $0x210] ss:$8 sps:$4 sm:$0xff]  }
 0x311   :  { %2703 = vmatprep.subr.bf16.mxu1 %v2702_v60 }
 0x314   :  { %2705 = vmatpush3.bf16.msra.mxu1 %v2702_v60  ;;  %v2870_v60 = vld [vmem:[#allocation4 + $0x234] ss:$8 sps:$4 sm:$0xff]  }
 0x315   :  { %2653 = vmatprep.subr.mxu1 %v1067_v8 }
 0x3da   :  { %v967_v62 = vpop.f32.mrb[8].mxu1 }
 0x3db   :  { %v968_v63 = vadd.f32 %v967_v62, %v884_v61  ;;  %v2632_v1 = vpop.f32.mrb[9].mxu1  ;;  %v2873_v62 = vld [vmem:[#allocation4 + $0x244] ss:$8 sps:$4 sm:$0xff]  }
 0x3dc   :  { %v970_v2 = vpop.f32.mrb[10].mxu1  ;;  %v2876_v1 = vld [vmem:[#allocation4 + $0x254] ss:$8 sps:$4 sm:$0xff]  }
 0x3dd   :  { %v974_v3 = vmax.f32 %v968_v63, 0.0  ;;  %v971_v4 = vadd.f32 %v970_v2, %v884_v61  ;;  %v2633_v5 = vpop.f32.mrb[11].mxu1  ;;  %v2868_v61 = vld [vmem:[#allocation4 + $0x230] ss:$8 sps:$4 sm:$0xff]   ;;  %v2871_v63 = vld [vmem:[#allocation4 + $0x240] ss:$8 sps:$4 sm:$0xff]  }
 0x3de   :  { %v2874_v2 = vld [vmem:[#allocation4 + $0x250] ss:$8 sps:$4 sm:$0xff]  }
 0x3df   :  { %v975_v7 = vmax.f32 %v971_v4, 0.0  ;;  %2650 = vmatprep.mubr.msk.f32.mxu1 %vm985_vm2, %v974_v3  ;;  %v2879_v3 = vld [vmem:[#allocation4 + $0x264] ss:$8 sps:$4 sm:$0xff]   ;;  %v2882_v4 = vld [vmem:[#allocation4 + $0x274] ss:$8 sps:$4 sm:$0xff]  }
 0x3e0   :  { %v2880_v5 = vld [vmem:[#allocation4 + $0x270] ss:$8 sps:$4 sm:$0xff]  }
 0x3e1   :  { %2651 = vmatmul.mubr.msk.f32.vlgmr.msra.gmra.mrb[12].mxu1 %vm985_vm2, %v975_v7  ;;  %v2883_v7 = vld [vmem:[#allocation2 + $0x20] ss:$16 sps:$4 sm:$0xff]  }
 0x3e2   :  { %2654 = vmatpush3.msra.mxu1 %v1067_v8  ;;  %v2885_v8 = vld [vmem:[#allocation2 + $0x24] ss:$16 sps:$4 sm:$0xff]  }
 0x3e3   :  { %2658 = vmatprep.subr.mxu1 %v1151_v14  ;;  %2131 = vmatprep.subr.bf16.mxu0 %v2885_v8  ;;  %v2954_v8 = vld [vmem:[#allocation2 + $0x18c] ss:$16 sps:$4 sm:$0xff]  }
 0x3e4   :  { %2132 = vmatpush1.bf16.msra.mxu0 %v2883_v7  ;;  %v2946_v7 = vld [vmem:[#allocation2 + $0x168] ss:$16 sps:$4 sm:$0xff]  }
 0x4b4   :  { %v2652_v10 = vpop.f32.mrb[12].mxu1 }
 0x4b5   :  { %v1058_v11 = vpop.f32.mrb[13].mxu1  ;;  %v1064_v13 = vadd.f32 %v2652_v10, %v984_v9  ;;  %v2891_v10 = vld [vmem:[#allocation2 + $0x44] ss:$16 sps:$4 sm:$0xff]  }
 0x4b6   :  { %v1059_v12 = vadd.f32 %v1058_v11, %v984_v9  ;;  %v2888_v9 = vld [vmem:[#allocation2 + $0x2c] ss:$16 sps:$4 sm:$0xff]   ;;  %v2889_v11 = vld [vmem:[#allocation2 + $0x40] ss:$16 sps:$4 sm:$0xff]   ;;  %2133 = vmatprep.subr.bf16.mxu0 %v2891_v10 }
 0x4b7   :  { %2134 = vmatpush1.bf16.msra.mxu0 %v2889_v11  ;;  %v2960_v10 = vld [vmem:[#allocation2 + $0x1ac] ss:$16 sps:$4 sm:$0xff]   ;;  %v2958_v11 = vld [vmem:[#allocation2 + $0x1a8] ss:$16 sps:$4 sm:$0xff]  }
 0x4b8   :  { %2655 = vmatprep.mubr.msk.f32.mxu1 %vm1069_vm3, %v1059_v12  ;;  %v2897_v12 = vld [vmem:[#allocation2 + $0x64] ss:$16 sps:$4 sm:$0xff]  }
 0x4b9   :  { %2656 = vmatmul.mubr.msk.f32.vlgmr.msra.gmra.mrb[14].mxu1 %vm1069_vm3, %v1064_v13  ;;  %v2895_v13 = vld [vmem:[#allocation2 + $0x60] ss:$16 sps:$4 sm:$0xff]   ;;  %2135 = vmatprep.subr.bf16.mxu0 %v2897_v12  ;;  %v2966_v12 = vld [vmem:[#allocation2 + $0x1cc] ss:$16 sps:$4 sm:$0xff]  }
 0x4ba   :  { %2659 = vmatpush3.msra.mxu1 %v1151_v14  ;;  %v2903_v14 = vld [vmem:[#allocation2 + $0x84] ss:$16 sps:$4 sm:$0xff]  }
 0x4bb   :  { %2663 = vmatprep.subr.mxu1 %v1234_v20  ;;  %2136 = vmatpush1.bf16.msra.mxu0 %v2895_v13  ;;  %v2964_v13 = vld [vmem:[#allocation2 + $0x1c8] ss:$16 sps:$4 sm:$0xff]  }
 0x4bc   :  { %2137 = vmatprep.subr.bf16.mxu0 %v2903_v14  ;;  %v2969_v14 = vld [vmem:[#allocation2 + $0x1e4] ss:$16 sps:$4 sm:$0xff]  }
 0x58c   :  { %v2657_v16 = vpop.f32.mrb[14].mxu1 }
 0x58d   :  { %v1142_v17 = vpop.f32.mrb[15].mxu1  ;;  %v1148_v19 = vadd.f32 %v2657_v16, %v1068_v15  ;;  %v2909_v16 = vld [vmem:[#allocation2 + $0xa4] ss:$16 sps:$4 sm:$0xff]  }
 0x58e   :  { %v1143_v18 = vadd.f32 %v1142_v17, %v1068_v15  ;;  %v2901_v15 = vld [vmem:[#allocation2 + $0x80] ss:$16 sps:$4 sm:$0xff]  }
 0x58f   :  { %2138 = vmatpush1.bf16.msra.mxu0 %v2901_v15  ;;  %v2907_v17 = vld [vmem:[#allocation2 + $0xa0] ss:$16 sps:$4 sm:$0xff]   ;;  %v2972_v15 = vld [vmem:[#allocation2 + $0x1ec] ss:$16 sps:$4 sm:$0xff]  }
 0x590   :  { %2660 = vmatprep.mubr.msk.f32.mxu1 %vm1069_vm3, %v1143_v18  ;;  %2139 = vmatprep.subr.bf16.mxu0 %v2909_v16  ;;  %v2915_v18 = vld [vmem:[#allocation2 + $0xc4] ss:$16 sps:$4 sm:$0xff]   ;;  %v2967_v16 = vld [vmem:[#allocation2 + $0x1e0] ss:$16 sps:$4 sm:$0xff]  }
 0x591   :  { %2661 = vmatmul.mubr.msk.f32.vlgmr.msra.gmra.mrb[16].mxu1 %vm1069_vm3, %v1148_v19  ;;  %v2913_v19 = vld [vmem:[#allocation2 + $0xc0] ss:$16 sps:$4 sm:$0xff]  }
 0x592   :  { %2664 = vmatpush3.msra.mxu1 %v1234_v20  ;;  %v2921_v20 = vld [vmem:[#allocation2 + $0xe4] ss:$16 sps:$4 sm:$0xff]  }
 0x593   :  { %2668 = vmatprep.subr.mxu1 %v1317_v26  ;;  %2140 = vmatpush1.bf16.msra.mxu0 %v2907_v17  ;;  %v2970_v17 = vld [vmem:[#allocation2 + $0x1e8] ss:$16 sps:$4 sm:$0xff]  }
 0x594   :  { %2141 = vmatprep.subr.bf16.mxu0 %v2915_v18  ;;  %v2975_v18 = vld [vmem:[#allocation2 + $0x204] ss:$16 sps:$4 sm:$0xff]  }
 0x597   :  { %2142 = vmatpush1.bf16.msra.mxu0 %v2913_v19  ;;  %v2978_v19 = vld [vmem:[#allocation2 + $0x20c] ss:$16 sps:$4 sm:$0xff]  }
 0x598   :  { %2143 = vmatprep.subr.bf16.mxu0 %v2921_v20  ;;  %v2973_v20 = vld [vmem:[#allocation2 + $0x200] ss:$16 sps:$4 sm:$0xff]  }
 0x664   :  { %v2662_v22 = vpop.f32.mrb[16].mxu1 }
 0x665   :  { %v1225_v23 = vpop.f32.mrb[17].mxu1  ;;  %v1231_v25 = vadd.f32 %v2662_v22, %v1152_v21  ;;  %v2927_v22 = vld [vmem:[#allocation2 + $0x104] ss:$16 sps:$4 sm:$0xff]  }
 0x666   :  { %v1226_v24 = vadd.f32 %v1225_v23, %v1152_v21  ;;  %v2919_v21 = vld [vmem:[#allocation2 + $0xe0] ss:$16 sps:$4 sm:$0xff]  }
 0x667   :  { %2144 = vmatpush1.bf16.msra.mxu0 %v2919_v21  ;;  %v2925_v23 = vld [vmem:[#allocation2 + $0x100] ss:$16 sps:$4 sm:$0xff]   ;;  %v2976_v21 = vld [vmem:[#allocation2 + $0x208] ss:$16 sps:$4 sm:$0xff]  }
 0x668   :  { %2665 = vmatprep.mubr.msk.f32.mxu1 %vm1069_vm3, %v1226_v24  ;;  %2145 = vmatprep.subr.bf16.mxu0 %v2927_v22  ;;  %v2933_v24 = vld [vmem:[#allocation2 + $0x124] ss:$16 sps:$4 sm:$0xff]   ;;  %v2467_v22 = vld [vmem:[%s3352_s1 + $0x23] ss:$8 sm:$0x3] }
 0x669   :  { %2666 = vmatmul.mubr.msk.f32.vlgmr.msra.gmra.mrb[18].mxu1 %vm1069_vm3, %v1231_v25  ;;  %v2931_v25 = vld [vmem:[#allocation2 + $0x120] ss:$16 sps:$4 sm:$0xff]  }
 0x66a   :  { %2669 = vmatpush3.msra.mxu1 %v1317_v26  ;;  %v2939_v26 = vld [vmem:[#allocation2 + $0x144] ss:$16 sps:$4 sm:$0xff]  }
 0x66b   :  { %2673 = vmatprep.subr.mxu1 %v1400_v32  ;;  %2146 = vmatpush1.bf16.msra.mxu0 %v2925_v23  ;;  %v1588_v23 = vrot.slane %v2467_v22, %v3153_v54 }
 0x66c   :  { %2147 = vmatprep.subr.bf16.mxu0 %v2933_v24  ;;  %v1592_v24 = vrot.slane %v2467_v22, %v3159_v56 }
 0x66f   :  { %2148 = vmatpush1.bf16.msra.mxu0 %v2931_v25 }
 0x670   :  { %2149 = vmatprep.subr.bf16.mxu0 %v2939_v26 }
 0x73c   :  { %v2667_v28 = vpop.f32.mrb[18].mxu1 }
 0x73d   :  { %v1308_v29 = vpop.f32.mrb[19].mxu1  ;;  %v1314_v31 = vadd.f32 %v2667_v28, %v1235_v27  ;;  %v2945_v28 = vld [vmem:[#allocation2 + $0x164] ss:$16 sps:$4 sm:$0xff]  }
 0x73e   :  { %v1309_v30 = vadd.f32 %v1308_v29, %v1235_v27  ;;  %v2937_v27 = vld [vmem:[#allocation2 + $0x140] ss:$16 sps:$4 sm:$0xff]  }
 0x73f   :  { %2150 = vmatpush1.bf16.msra.mxu0 %v2937_v27  ;;  %v2943_v29 = vld [vmem:[#allocation2 + $0x160] ss:$16 sps:$4 sm:$0xff]  }
 0x740   :  { %2670 = vmatprep.mubr.msk.f32.mxu1 %vm1069_vm3, %v1309_v30  ;;  %2151 = vmatprep.subr.bf16.mxu0 %v2945_v28  ;;  %v2951_v30 = vld [vmem:[#allocation2 + $0x184] ss:$16 sps:$4 sm:$0xff]  }
 0x741   :  { %2671 = vmatmul.mubr.msk.f32.vlgmr.msra.gmra.mrb[20].mxu1 %vm1069_vm3, %v1314_v31  ;;  %v2949_v31 = vld [vmem:[#allocation2 + $0x180] ss:$16 sps:$4 sm:$0xff]  }
 0x742   :  { %2674 = vmatpush3.msra.mxu1 %v1400_v32  ;;  %v2957_v32 = vld [vmem:[#allocation2 + $0x1a4] ss:$16 sps:$4 sm:$0xff]  }
 0x743   :  { %2678 = vmatprep.subr.bf16.mxu1 %v3040_v6  ;;  %2152 = vmatpush1.bf16.msra.mxu0 %v2943_v29 }
 0x744   :  { %2153 = vmatprep.subr.bf16.mxu0 %v2951_v30 }
 0x747   :  { %2154 = vmatpush1.bf16.msra.mxu0 %v2949_v31 }
 0x748   :  { %2155 = vmatprep.subr.bf16.mxu0 %v2957_v32 }
 0x814   :  { %v2672_v34 = vpop.f32.mrb[20].mxu1 }
 0x815   :  { %v1391_v35 = vpop.f32.mrb[21].mxu1  ;;  %v1397_v38 = vadd.f32 %v2672_v34, %v1318_v33  ;;  %v2963_v34 = vld [vmem:[#allocation2 + $0x1c4] ss:$16 sps:$4 sm:$0xff]  }
 0x816   :  { %v1392_v36 = vadd.f32 %v1391_v35, %v1318_v33  ;;  %v2955_v33 = vld [vmem:[#allocation2 + $0x1a0] ss:$16 sps:$4 sm:$0xff]  }
 0x817   :  { %2156 = vmatpush1.bf16.msra.mxu0 %v2955_v33  ;;  %v2961_v35 = vld [vmem:[#allocation2 + $0x1c0] ss:$16 sps:$4 sm:$0xff]  }
 0x818   :  { %2336 = vrot.lane.b32.xlu0 %v1392_v36, %s3035_s12  ;;  %2675 = vmatprep.mubr.msk.f32.mxu1 %vm1069_vm3, %v1392_v36  ;;  %v1494_v36 = vld [vmem:[%s3352_s1 + $0x22] ss:$0 sm:$0xff] }
 0x819   :  { %2676 = vmatmul.mubr.msk.f32.vlgmr.msra.gmra.mrb[22].mxu1 %vm1069_vm3, %v1397_v38  ;;  %2157 = vmatprep.subr.bf16.mxu0 %v2963_v34 }
 0x81a   :  { %2679 = vmatpush3.bf16.msra.mxu1 %v2855_v37  ;;  %2686 = vmatprep.mubr.msk.bf16.mxu1 %vm3041_vm1, %v3040_v6 }
 0x81b   :  { %2680 = vmatprep.subr.bf16.mxu1 %v3040_v6  ;;  %2158 = vmatpush1.bf16.msra.mxu0 %v2961_v35 }
 0x81c   :  { %2338 = vrot.lane.b32.xlu0 %v1397_v38, %s3035_s12  ;;  %2159 = vmatprep.subr.bf16.mxu0 %v2969_v14 }
 0x81e   :  { %2681 = vmatpush3.bf16.msra.mxu1 %v2856_v39 }
 0x81f   :  { %2682 = vmatprep.subr.bf16.mxu1 %v3040_v6  ;;  %2160 = vmatpush1.bf16.msra.mxu0 %v2967_v16 }
 0x820   :  { %2161 = vmatprep.subr.bf16.mxu0 %v2975_v18 }
 0x822   :  { %2683 = vmatpush3.bf16.msra.mxu1 %v2857_v40 }
 0x823   :  { %2684 = vmatprep.subr.bf16.mxu1 %v3040_v6  ;;  %v2864_v6 = vld [vmem:[#allocation4 + $0x214] ss:$8 sps:$4 sm:$0xff]   ;;  %2162 = vmatpush1.bf16.msra.mxu0 %v2973_v20 }
 0x826   :  { %2685 = vmatpush3.bf16.msra.mxu1 %v2858_v41 }
 0x827   :  { %1675 = vmatprep.subr.bf16.mxu1 %v2861_v42 }
 0x8ec   :  { %v2677_v44 = vpop.f32.mrb[22].mxu1 }
 0x8ed   :  { %v1480_v45 = vadd.f32 %v2677_v44, %v1401_v43  ;;  %v1474_v46 = vpop.f32.mrb[23].mxu1 }
 0x8ee   :  { %v1475_v47 = vadd.f32 %v1474_v46, %v1401_v43 }
 0x8ef   :  { %v1484_v48 = vmax.f32 %v1480_v45, 0.0  ;;  %v2886_v45 = vld [vmem:[#allocation2 + $0x28] ss:$16 sps:$4 sm:$0xff]  }
 0x8f0   :  { %v1483_v49 = vmax.f32 %v1475_v47, 0.0  ;;  %v2894_v47 = vld [vmem:[#allocation2 + $0x4c] ss:$16 sps:$4 sm:$0xff]  }
 0x8f2   :  { %v1493_v51 = vpack.c.bf16 %v1484_v48, %v1483_v49  ;;  %v2892_v48 = vld [vmem:[#allocation2 + $0x48] ss:$16 sps:$4 sm:$0xff]   ;;  %v2900_v49 = vld [vmem:[#allocation2 + $0x6c] ss:$16 sps:$4 sm:$0xff]  }
 0x8f4   :  { %2687 = vmatmul.mubr.msk.bf16.vlgmr.msra.gmra.mrb[24].mxu1 %vm985_vm2, %v1493_v51  ;;  %v2906_v51 = vld [vmem:[#allocation2 + $0x8c] ss:$16 sps:$4 sm:$0xff]  }
 0x8f5   :  { %1676 = vmatpush1.bf16.msra.mxu1 %v2859_v50  ;;  %1707 = vmatprep.mubr.bf16.mxu1 %v3039_v0  ;;  %v2877_v0 = vld [vmem:[#allocation4 + $0x260] ss:$8 sps:$4 sm:$0xff]  }
 0x8f6   :  { %1677 = vmatprep.subr.bf16.mxu1 %v2864_v6  ;;  %v2898_v50 = vld [vmem:[#allocation2 + $0x68] ss:$16 sps:$4 sm:$0xff]  }
 0x8f7   :  { %v2904_v6 = vld [vmem:[#allocation2 + $0x88] ss:$16 sps:$4 sm:$0xff]  }
 0x8f9   :  { %1678 = vmatpush1.bf16.msra.mxu1 %v2862_v52  ;;  %v2912_v52 = vld [vmem:[#allocation2 + $0xac] ss:$16 sps:$4 sm:$0xff]  }
 0x8fa   :  { %1679 = vmatprep.subr.bf16.mxu1 %v2867_v55  ;;  %v2910_v55 = vld [vmem:[#allocation2 + $0xa8] ss:$16 sps:$4 sm:$0xff]  }
 0x8fd   :  { %1680 = vmatpush1.bf16.msra.mxu1 %v2865_v59  ;;  %v2918_v59 = vld [vmem:[#allocation2 + $0xcc] ss:$16 sps:$4 sm:$0xff]  }
 0x8fe   :  { %1681 = vmatprep.subr.bf16.mxu1 %v2870_v60  ;;  %v2916_v60 = vld [vmem:[#allocation2 + $0xc8] ss:$16 sps:$4 sm:$0xff]  }
 0x901   :  { %1682 = vmatpush1.bf16.msra.mxu1 %v2868_v61  ;;  %v2924_v61 = vld [vmem:[#allocation2 + $0xec] ss:$16 sps:$4 sm:$0xff]  }
 0x902   :  { %1683 = vmatprep.subr.bf16.mxu1 %v2873_v62  ;;  %v2922_v62 = vld [vmem:[#allocation2 + $0xe8] ss:$16 sps:$4 sm:$0xff]  }
 0x905   :  { %1684 = vmatpush1.bf16.msra.mxu1 %v2871_v63  ;;  %v2930_v63 = vld [vmem:[#allocation2 + $0x10c] ss:$16 sps:$4 sm:$0xff]  }
 0x906   :  { %1685 = vmatprep.subr.bf16.mxu1 %v2876_v1  ;;  %v2928_v1 = vld [vmem:[#allocation2 + $0x108] ss:$16 sps:$4 sm:$0xff]  }
 0x909   :  { %1686 = vmatpush1.bf16.msra.mxu1 %v2874_v2  ;;  %v2936_v2 = vld [vmem:[#allocation2 + $0x12c] ss:$16 sps:$4 sm:$0xff]  }
 0x90a   :  { %1687 = vmatprep.subr.bf16.mxu1 %v2879_v3  ;;  %v2934_v3 = vld [vmem:[#allocation2 + $0x128] ss:$16 sps:$4 sm:$0xff]  }
 0x90d   :  { %1688 = vmatpush1.bf16.msra.mxu1 %v2877_v0  ;;  %v2942_v0 = vld [vmem:[#allocation2 + $0x14c] ss:$16 sps:$4 sm:$0xff]  }
 0x90e   :  { %1689 = vmatprep.subr.bf16.mxu1 %v2882_v4  ;;  %v2940_v4 = vld [vmem:[#allocation2 + $0x148] ss:$16 sps:$4 sm:$0xff]  }
 0x911   :  { %1690 = vmatpush1.bf16.msra.mxu1 %v2880_v5  ;;  %v2948_v5 = vld [vmem:[#allocation2 + $0x16c] ss:$16 sps:$4 sm:$0xff]  }
 0x912   :  { %2174 = vmatprep.subr.bf16.mxu1 %v2888_v9  ;;  %v2952_v9 = vld [vmem:[#allocation2 + $0x188] ss:$16 sps:$4 sm:$0xff]  }
 0x9c7   :  { %v1556_v37 = vpop.f32.mrb[24].mxu1 }
 0x9c8   :  { %v1557_v38 = vadd.f32 %v1556_v37, %v1494_v36  ;;  %v2688_v39 = vpop.f32.mrb[25].mxu1 }
 0x9c9   :  { %v1559_v40 = vpop.f32.mrb[26].mxu1  ;;  %v2981_v39 = vld [vmem:[#allocation2 + $0x224] ss:$16 sps:$4 sm:$0xff]  }
 0x9ca   :  { %v1560_v41 = vadd.f32 %v1559_v40, %v1494_v36  ;;  %v2689_v42 = vpop.f32.mrb[27].mxu1  ;;  %v1563_v43 = vmax.f32 %v1557_v38, 0.0  ;;  %v2979_v40 = vld [vmem:[#allocation2 + $0x220] ss:$16 sps:$4 sm:$0xff]   ;;  %2254 = vmatprep.subr.bf16.mxu0 %v2981_v39 }
 0x9cb   :  { %v2484_v42 = vld [vmem:[%s3352_s1 + $0x24] ss:$8 sm:$0xf] }
 0x9cc   :  { %v1564_v44 = vmax.f32 %v1560_v41, 0.0  ;;  %v2984_v41 = vld [vmem:[#allocation2 + $0x22c] ss:$16 sps:$4 sm:$0xff]  }
 0x9ce   :  { %v1581_v46 = vpack.c.bf16 %v1564_v44, %v1563_v43  ;;  %v1794_v43 = vrot.slane %v2484_v42, %v3153_v54  ;;  %v1802_v44 = vrot.slane %v2484_v42, %v74_v57 }
 0x9d0   :  { %1708 = vmatmul.mubr.bf16.vlgmr.msra.gmra.mrb[28].mxu1 %v1581_v46  ;;  %v1806_v46 = vrot.slane %v2484_v42, %v78_v58 }
 0x9d1   :  { %2175 = vmatpush1.bf16.msra.mxu1 %v2886_v45  ;;  %v1798_v45 = vrot.slane %v2484_v42, %v3159_v56 }
 0x9d2   :  { %2176 = vmatprep.subr.bf16.mxu1 %v2894_v47 }
 0x9d5   :  { %2177 = vmatpush1.bf16.msra.mxu1 %v2892_v48 }
 0x9d6   :  { %2178 = vmatprep.subr.bf16.mxu1 %v2900_v49 }
 0x9d9   :  { %2179 = vmatpush1.bf16.msra.mxu1 %v2898_v50 }
 0x9da   :  { %2180 = vmatprep.subr.bf16.mxu1 %v2906_v51 }
 0x9dd   :  { %2181 = vmatpush1.bf16.msra.mxu1 %v2904_v6 }
 0x9de   :  { %2182 = vmatprep.subr.bf16.mxu1 %v2912_v52 }
 0x9e1   :  { %2183 = vmatpush1.bf16.msra.mxu1 %v2910_v55 }
 0x9e2   :  { %2184 = vmatprep.subr.bf16.mxu1 %v2918_v59 }
 0x9e5   :  { %2185 = vmatpush1.bf16.msra.mxu1 %v2916_v60 }
 0x9e6   :  { %2186 = vmatprep.subr.bf16.mxu1 %v2924_v61 }
 0x9e9   :  { %2187 = vmatpush1.bf16.msra.mxu1 %v2922_v62 }
 0x9ea   :  { %2188 = vmatprep.subr.bf16.mxu1 %v2930_v63 }
 0x9ed   :  { %2189 = vmatpush1.bf16.msra.mxu1 %v2928_v1 }
 0x9ee   :  { %2190 = vmatprep.subr.bf16.mxu1 %v2936_v2 }
 0x9f1   :  { %2191 = vmatpush1.bf16.msra.mxu1 %v2934_v3 }
 0x9f2   :  { %2192 = vmatprep.subr.bf16.mxu1 %v2942_v0 }
 0x9f5   :  { %2193 = vmatpush1.bf16.msra.mxu1 %v2940_v4 }
 0x9f6   :  { %2194 = vmatprep.subr.bf16.mxu1 %v2948_v5 }
 0x9f9   :  { %2195 = vmatpush1.bf16.msra.mxu1 %v2946_v7 }
 0x9fa   :  { %2196 = vmatprep.subr.bf16.mxu1 %v2954_v8 }
 0x9fd   :  { %2197 = vmatpush1.bf16.msra.mxu1 %v2952_v9 }
 0x9fe   :  { %2198 = vmatprep.subr.bf16.mxu1 %v2960_v10 }
 0xa01   :  { %2199 = vmatpush1.bf16.msra.mxu1 %v2958_v11  ;;  %v2982_v11 = vld [vmem:[#allocation2 + $0x228] ss:$16 sps:$4 sm:$0xff]  }
 0xa02   :  { %2200 = vmatprep.subr.bf16.mxu1 %v2966_v12  ;;  %v2337_v12 = vpop.permute.xlu0 %2336 }
 0xa05   :  { %2201 = vmatpush1.bf16.msra.mxu1 %v2964_v13  ;;  %v2233_v13 = vld [vmem:[%s3352_s1 + $0x25] ss:$0 sm:$0xff] }
 0xa06   :  { %2202 = vmatprep.subr.bf16.mxu1 %v2972_v15 }
 0xa09   :  { %2203 = vmatpush1.bf16.msra.mxu1 %v2970_v17 }
 0xa0a   :  { %2204 = vmatprep.subr.bf16.mxu1 %v2978_v19 }
 0xa0d   :  { %2205 = vmatpush1.bf16.msra.mxu1 %v2976_v21  ;;  %v2339_v21 = vpop.permute.xlu0 %2338 }
 0xaa3   :  { %v1709_v25 = vpop.f32.mrb[28].mxu1 }
 0xaa4   :  { %v1710_v26 = vadd.f32 %v1709_v25, %v1588_v23  ;;  %v1711_v27 = vpop.f32.mrb[29].mxu1 }
 0xaa5   :  { %v1712_v28 = vadd.f32 %v1711_v27, %v1592_v24  ;;  %v1713_v29 = vpop.f32.mrb[30].mxu1 }
 0xaa6   :  { %v1714_v30 = vadd.f32 %v1713_v29, %v1588_v23  ;;  %v1715_v31 = vpop.f32.mrb[31].mxu1  ;;  %v1718_v33 = vmax.f32 %v1710_v26, 0.0 }
 0xaa7   :  { %v1716_v32 = vadd.f32 %v1715_v31, %v1592_v24  ;;  %v1719_v35 = vmax.f32 %v1712_v28, 0.0 }
 0xaa8   :  { %v1720_v34 = vmax.f32 %v1714_v30, 0.0 }
 0xaa9   :  { %v1721_v36 = vmax.f32 %v1716_v32, 0.0 }
 0xaaa   :  { %v1786_v37 = vpack.c.bf16 %v1720_v34, %v1718_v33 }
 0xaab   :  { %v1787_v38 = vpack.c.bf16 %v1721_v36, %v1719_v35 }
 0xaad   :  { %2163 = vmatprep.mubr.bf16.mxu0 %v1787_v38  ;;  %2206 = vmatprep.mubr.bf16.mxu1 %v1787_v38 }
 0xaae   :  { %2164 = vmatmul.mubr.bf16.vlgmr.msra.gmra.mrb[8].mxu0 %v1786_v37  ;;  %2207 = vmatmul.mubr.bf16.vlgmr.msra.gmra.mrb[32].mxu1 %v1786_v37 }
 0xaaf   :  { %2255 = vmatpush1.bf16.xpose.msra.mxu0 %v2979_v40 }
 0xab0   :  { %2295 = vmatprep.subr.bf16.mxu0 %v2984_v41 }
 0xb81   :  { %v2165_v47 = vpop.f32.mrb[8].mxu0  ;;  %v2208_v48 = vpop.f32.mrb[32].mxu1 }
 0xb82   :  { %v2166_v49 = vadd.f32 %v2165_v47, %v1794_v43  ;;  %v2209_v50 = vadd.f32 %v2208_v48, %v1802_v44  ;;  %v2167_v51 = vpop.f32.mrb[9].mxu0  ;;  %v2210_v6 = vpop.f32.mrb[33].mxu1 }
 0xb83   :  { %v2168_v52 = vadd.f32 %v2167_v51, %v1798_v45  ;;  %v2211_v55 = vadd.f32 %v2210_v6, %v1806_v46  ;;  %v2169_v59 = vpop.f32.mrb[10].mxu0  ;;  %v2212_v60 = vpop.f32.mrb[34].mxu1 }
 0xb84   :  { %v2170_v61 = vadd.f32 %v2169_v59, %v1794_v43  ;;  %v2213_v54 = vadd.f32 %v2212_v60, %v1802_v44  ;;  %v2171_v62 = vpop.f32.mrb[11].mxu0  ;;  %v2214_v63 = vpop.f32.mrb[35].mxu1  ;;  %v2217_v56 = vmax.f32 %v2166_v49, 0.0  ;;  %v2219_v2 = vmax.f32 %v2209_v50, 0.0 }
 0xb85   :  { %v2172_v57 = vadd.f32 %v2171_v62, %v1798_v45  ;;  %v2215_v1 = vadd.f32 %v2214_v63, %v1806_v46  ;;  %v2218_v3 = vmax.f32 %v2168_v52, 0.0  ;;  %v2220_v0 = vmax.f32 %v2211_v55, 0.0 }
 0xb86   :  { %v2221_v53 = vmax.f32 %v2170_v61, 0.0  ;;  %v2223_v58 = vmax.f32 %v2213_v54, 0.0 }
 0xb87   :  { %v2222_v4 = vmax.f32 %v2172_v57, 0.0  ;;  %v2224_v5 = vmax.f32 %v2215_v1, 0.0 }
 0xb88   :  { %v2225_v7 = vpack.c.bf16 %v2221_v53, %v2217_v56  ;;  %v2227_v8 = vpack.c.bf16 %v2223_v58, %v2219_v2 }
 0xb89   :  { %v2226_v9 = vpack.c.bf16 %v2222_v4, %v2218_v3  ;;  %v2228_v10 = vpack.c.bf16 %v2224_v5, %v2220_v0 }
 0xb8b   :  { %2286 = vmatprep.mubr.bf16.mxu0 %v2226_v9 }
 0xb8c   :  { %2287 = vmatmul.mubr.bf16.vlgmr.msra.gmra.mrb[12].mxu0 %v2225_v7 }
 0xb8d   :  { %2296 = vmatpush1.bf16.xpose.msra.mxu0 %v2982_v11  ;;  %2327 = vmatprep.mubr.bf16.mxu0 %v2228_v10 }
 0xb98   :  { %2328 = vmatmul.mubr.bf16.vlgmr.msra.gmra.mrb[12].mxu0 %v2227_v8 }
 0xc6b   :  { %v2329_v14 = vpop.f32.mrb[12].mxu0 }
 0xc6c   :  { %v2710_v15 = vadd.f32 %v2329_v14, %v2233_v13  ;;  %v2331_v16 = vpop.f32.mrb[13].mxu0 }
 0xc6d   :  { %v2332_v17 = vpop.f32.mrb[14].mxu0 }
 0xc6e   :  { %v2342_v18 = vsel %vm104_vm0, %v2710_v15, %v2337_v12  ;;  %v2711_v19 = vadd.f32 %v2332_v17, %v2233_v13  ;;  %v2334_v20 = vpop.f32.mrb[15].mxu0 }
 0xc6f   :  { %v2345_v22 = vsel %vm2344_vm4, %v2342_v18, 0.0 }
 0xc70   :  { %2347 = vst [vmem:[%s3358_s7] sm:$0xff] %v2345_v22  ;;  %v2343_v23 = vsel %vm104_vm0, %v2711_v19, %v2339_v21 }
 0xc71   :  { %v2346_v24 = vsel %vm2344_vm4, %v2343_v23, 0.0 }
 0xc72   :  { %2348 = vst [vmem:[%s3358_s7 + $0x8] sm:$0xff] %v2346_v24 }
 0xc73   :  { %2353 = vsyncpa [#allocation3], 1 }
 0xc74   :  { %2354 = vsyncpa [#allocation5], 1 }

</bundles_post_ra>
